<compile_context>
chip_gen: v7x
topology: tpu7x:2x2x1
jax: 0.10.0
libtpu: 0.0.40
codegen_flags: <defaults>
</compile_context>

<pallas_src>
import functools

import jax
import jax.numpy as jnp
from jax import lax
from jax.experimental import pallas as pl
from jax.experimental.pallas import tpu as pltpu


# ----------------------------- Pallas kernel -------------------------------
def _fused_kernel(v_ref, q_ref, att_ref, ch_ref,
                  wv_ref, wq_ref, wa_ref, bvq_ref,
                  qsum_ref, *, compute_dtype=None):
    TB, O, Dv = v_ref.shape
    _, Q, Dq = q_ref.shape
    G = wv_ref.shape[0]
    M = wv_ref.shape[-1]

    def cast(x):
        return x if compute_dtype is None else x.astype(compute_dtype)

    v_flat = v_ref[...].reshape(TB * O, Dv)          # constant across glimpses
    q_cur = q_ref[...]                               # (TB, Q, M) — resident across glimpses
    att = att_ref[...]                               # (TB, G, Q, O)   (attention transposed)
    ch = ch_ref[...]                                 # (TB, G, M)      (count_h + ba, precomputed)
    bvq = bvq_ref[...]                               # (G, 2, M)       (bv, bq packed)

    # Statically unrolled glimpse loop: weights stay resident, q never round-trips to HBM.
    for g in range(G):
        wv = wv_ref[g]                               # (Dv, M)
        wq = wq_ref[g]                               # (Dq, M)
        wa = wa_ref[g]                               # (M, M)

        # FCNet lin_v / lin_q, flattened so the MXU sees TB*O / TB*Q rows.
        v_lin = jnp.maximum(
            jnp.dot(cast(v_flat), cast(wv), preferred_element_type=jnp.float32)
            + bvq[g, 0:1], 0.0).reshape(TB, O, M)
        q_lin = jnp.maximum(
            jnp.dot(cast(q_cur.reshape(TB * Q, Dq)), cast(wq),
                    preferred_element_type=jnp.float32)
            + bvq[g, 1:2], 0.0).reshape(TB, Q, M)

        # Bilinear h[b,m] = sum_{i,j} v_lin[b,i,m] * atten[b,i,j] * q_lin[b,j,m]
        # att holds atten^T (b, g, j, i): batched (Q,O)x(O,M) contraction, object axis on lanes.
        t = lax.dot_general(cast(att[:, g]), cast(v_lin),
                            (((2,), (1,)), ((0,), (0,))),
                            preferred_element_type=jnp.float32)      # (TB, Q, M)
        h = jnp.sum(t * q_lin, axis=1)                               # (TB, M)

        # lin_atten (linear, no activation); its bias ba is pre-folded into ch.
        atten_h = jnp.dot(cast(h), cast(wa),
                          preferred_element_type=jnp.float32)        # (TB, M)
        q_cur = q_cur + (atten_h + ch[:, g])[:, None, :]             # broadcast over que_len

    # Module output q.sum(1): sublane/lane-dense (TB, M) store.
    qsum_ref[...] = jnp.sum(q_cur, axis=1)


# ------------------------------ JAX wrapper ---------------------------------
def _vmem_estimate(TB, O, Q, Dv, Dq, M, G):
    f32 = 4
    act_blocks = 2 * f32 * (TB * O * Dv + TB * Q * Dq + TB * G * Q * O + TB * G * M)
    weights = 2 * f32 * G * (Dv * M + Dq * M + M * M + 2 * M)
    out_block = 2 * f32 * TB * M
    temporaries = f32 * (3 * TB * Q * M + TB * O * M)
    return act_blocks + weights + out_block + temporaries


def apply_attention(v, q, boxes, v_mask, q_mask, atten, logits, count_layer, params,
                    batch_tile=None, compute_dtype=None):
    """Pallas-backed ApplyAttention.forward. v_mask / q_mask are unused (as in the reference)."""
    del v_mask, q_mask
    B, O, Dv = v.shape
    _, Q, Dq = q.shape
    G = atten.shape[1]
    M = params[0]["wv"].shape[1]
    assert Dq == M, "residual `q + atten_h` requires q_features == mid_features"

    # --- batch-tile selection: prefer TB % 8 == 0 (dense output stores) and >=2 grid steps
    # (so both v7x TensorCores get work), subject to a rough VMEM budget. -------------------
    if batch_tile is None:
        budget = 24 * 1024 * 1024
        divs = [t for t in range(min(B, 64), 0, -1) if B % t == 0]
        pick = None
        for t in divs:
            if t % 8 == 0 and B // t >= 2 and _vmem_estimate(t, O, Q, Dv, Dq, M, G) <= budget:
                pick = t
                break
        if pick is None:
            for t in divs:
                if (t % 8 == 0 or t == B) and _vmem_estimate(t, O, Q, Dv, Dq, M, G) <= budget:
                    pick = t
                    break
        batch_tile = pick if pick is not None else B
    TB = batch_tile
    assert B % TB == 0, (B, TB)
    assert TB % 8 == 0 or TB == B, \
        "output block (TB, M) needs TB % 8 == 0 (or TB == B) for dense stores"

    # --- stack per-glimpse weights (resident inside the kernel, indexed with static g) ------
    stk = lambda name: jnp.stack([p[name] for p in params])
    wv, bv = stk("wv"), stk("bv")          # (G, Dv, M), (G, 1, M)
    wq, bq = stk("wq"), stk("bq")          # (G, Dq, M), (G, 1, M)
    wa, ba = stk("wa"), stk("ba")          # (G, M, M),  (G, 1, M)
    wc, bc = stk("wc"), stk("bc")          # (G, O+1, M),(G, 1, M)
    bvq = jnp.concatenate([bv, bq], axis=1)                              # (G, 2, M)

    # --- count branch hoisted out of the kernel: one batched XLA GEMM for all (B, G).
    # lin_atten's bias ba is folded in here so only one bias tensor enters the kernel. -------
    boxes_t = jnp.swapaxes(boxes, 1, 2)                                  # (B, 4, O)
    logits_max = jnp.max(logits, axis=3)                                 # (B, G, O)
    cembs = jax.vmap(lambda lm: count_layer(boxes_t, lm),
                     in_axes=1, out_axes=1)(logits_max)                  # (B, G, O+1)
    count_h = jax.nn.relu(jnp.einsum("bgc,gcm->bgm", cembs, wc) + bc[None, :, 0, :])
    ch = count_h + ba[None, :, 0, :]                                     # (B, G, M)

    # Attention transposed so the (usually larger) object axis sits on lanes in the kernel.
    att_t = jnp.swapaxes(atten, 2, 3)                                    # (B, G, Q, O)

    vmem_limit = min(max(int(1.5 * _vmem_estimate(TB, O, Q, Dv, Dq, M, G)),
                         32 * 1024 * 1024), 64 * 1024 * 1024)

    qsum = pl.pallas_call(
        functools.partial(_fused_kernel, compute_dtype=compute_dtype),
        out_shape=jax.ShapeDtypeStruct((B, M), jnp.float32),
        grid_spec=pltpu.PrefetchScalarGridSpec(
            num_scalar_prefetch=0,
            grid=(B // TB,),                                 # single (parallel) batch-tile axis
            in_specs=[
                pl.BlockSpec((TB, O, Dv), lambda ib: (ib, 0, 0)),        # v
                pl.BlockSpec((TB, Q, Dq), lambda ib: (ib, 0, 0)),        # q
                pl.BlockSpec((TB, G, Q, O), lambda ib: (ib, 0, 0, 0)),   # atten^T (all glimpses)
                pl.BlockSpec((TB, G, M), lambda ib: (ib, 0, 0)),         # count_h + ba
                pl.BlockSpec((G, Dv, M), lambda ib: (0, 0, 0)),          # wv  (resident)
                pl.BlockSpec((G, Dq, M), lambda ib: (0, 0, 0)),          # wq  (resident)
                pl.BlockSpec((G, M, M), lambda ib: (0, 0, 0)),           # wa  (resident)
                pl.BlockSpec((G, 2, M), lambda ib: (0, 0, 0)),           # packed bv/bq (resident)
            ],
            out_specs=pl.BlockSpec((TB, M), lambda ib: (ib, 0)),
        ),
        compiler_params=pltpu.CompilerParams(
            dimension_semantics=("parallel",),
            vmem_limit_bytes=vmem_limit),
    )(v, q, att_t, ch, wv, wq, wa, bvq)
    return qsum


def apply_attention_ref(v, q, boxes, v_mask, q_mask, atten, logits, count_layer, params):
    """Pure-JAX reference mirroring the PyTorch forward exactly."""
    glimpses = atten.shape[1]
    for g in range(glimpses):
        p = params[g]
        v_lin = jax.nn.relu(v @ p["wv"] + p["bv"])                      # (B, O, M)
        q_lin = jax.nn.relu(q @ p["wq"] + p["bq"])                      # (B, Q, M)
        h = jnp.einsum("bim,bij,bjm->bm", v_lin, atten[:, g], q_lin)    # (B, M)
        atten_h = h @ p["wa"] + p["ba"]                                 # (B, M)
        logits_max = jnp.max(logits[:, g], axis=2)
        cemb = count_layer(jnp.swapaxes(boxes, 1, 2), logits_max)
        count_h = jax.nn.relu(cemb @ p["wc"] + p["bc"])                 # (B, M)
        q = q + atten_h[:, None, :] + count_h[:, None, :]
    return q.sum(axis=1)


# --------------------------- parameter synthesis -----------------------------
def init_params(key, glimpses, v_feat, q_feat, mid, num_obj):
    params = []
    for g in range(glimpses):
        kg = jax.random.fold_in(key, g)
        ks = jax.random.split(kg, 4)

        def lin(k, i, o):
            kw, kb = jax.random.split(k)
            w = jax.random.normal(kw, (i, o), jnp.float32) / jnp.sqrt(jnp.float32(i))
            b = 0.01 * jax.random.normal(kb, (1, o), jnp.float32)
            return w, b

        wv, bv = lin(ks[0], v_feat, mid)
        wq, bq = lin(ks[1], q_feat, mid)
        wa, ba = lin(ks[2], mid, mid)
        wc, bc = lin(ks[3], num_obj + 1, mid)
        params.append(dict(wv=wv, bv=bv, wq=wq, bq=bq, wa=wa, ba=ba, wc=wc, bc=bc))
    return params


def make_count_layer(key, num_obj):
    # Deterministic stand-in for the external Counter module: maps
    # (boxes.transpose(1,2), attention-max) -> (B, num_obj+1) count embedding.
    W = 0.1 * jax.random.normal(key, (num_obj + 4, num_obj + 1), jnp.float32)

    def count_layer(boxes_t, att_max):
        # boxes_t: (B, 4, num_obj), att_max: (B, num_obj)
        feat = jnp.concatenate([boxes_t.mean(axis=2), att_max], axis=1)  # (B, 4+num_obj)
        return jax.nn.sigmoid(feat @ W)                                   # (B, num_obj+1)

    return count_layer


# ---------------------------------- main -------------------------------------
if __name__ == "__main__":
    B, O, Q = 16, 16, 16         # batch, num_obj, que_len
    Dv, Dq, M = 128, 128, 128    # v_features, q_features, mid_features (Dq == M; M lane-dense)
    G = 2                        # glimpses

    key = jax.random.PRNGKey(0)
    k = jax.random.split(key, 8)
    v = jax.random.normal(k[0], (B, O, Dv), jnp.float32)
    q = jax.random.normal(k[1], (B, Q, Dq), jnp.float32)
    boxes = jax.random.uniform(k[2], (B, O, 4), jnp.float32)
    v_mask = jnp.ones((B, O), jnp.float32)
    q_mask = jnp.ones((B, Q), jnp.float32)
    atten = jax.nn.softmax(jax.random.normal(k[3], (B, G, O, Q), jnp.float32), axis=-1)
    logits = jax.random.normal(k[4], (B, G, O, Q), jnp.float32)

    params = init_params(k[5], G, Dv, Dq, M, O)
    count_layer = make_count_layer(k[6], O)

    # compute_dtype=jnp.bfloat16 is the recommended production setting (loosen tolerance then);
    # f32 kept here so the tight correctness check below holds.
    out = apply_attention(v, q, boxes, v_mask, q_mask, atten, logits, count_layer, params)
    out = jax.block_until_ready(out)

    ref = apply_attention_ref(v, q, boxes, v_mask, q_mask, atten, logits, count_layer, params)
    assert out.shape == (B, M), out.shape
    err = float(jnp.max(jnp.abs(out - ref)))
    assert jnp.allclose(out, ref, atol=1e-3, rtol=1e-3), err
    print("KERNEL_OK")
</pallas_src>

<mosaic_0001>
module attributes {stable_mosaic.version = 11 : i64} {
  func.func @_fused_kernel(%arg0: i32, %arg1: memref<8x16x128xf32, #tpu.memory_space<vmem>>, %arg2: memref<8x16x128xf32, #tpu.memory_space<vmem>>, %arg3: memref<8x2x16x16xf32, #tpu.memory_space<vmem>>, %arg4: memref<8x2x128xf32, #tpu.memory_space<vmem>>, %arg5: memref<2x128x128xf32, #tpu.memory_space<vmem>>, %arg6: memref<2x128x128xf32, #tpu.memory_space<vmem>>, %arg7: memref<2x128x128xf32, #tpu.memory_space<vmem>>, %arg8: memref<2x2x128xf32, #tpu.memory_space<vmem>>, %arg9: memref<8x128xf32, #tpu.memory_space<vmem>>) attributes {dimension_semantics = [#tpu.dimension_semantics<parallel>], iteration_bounds = array<i64: 2>, scalar_prefetch = 0 : i64, scratch_operands = 0 : i64, tpu.core_type = #tpu.core_type<tc>, window_params = [{transform_indices = @transform_0, window_bounds = array<i64: 8, 16, 128>}, {transform_indices = @transform_1, window_bounds = array<i64: 8, 16, 128>}, {transform_indices = @transform_2, window_bounds = array<i64: 8, 2, 16, 16>}, {transform_indices = @transform_3, window_bounds = array<i64: 8, 2, 128>}, {pipeline_mode = #tpu.pipeline_mode<synchronous>, transform_indices = @transform_4, window_bounds = array<i64: 2, 128, 128>}, {pipeline_mode = #tpu.pipeline_mode<synchronous>, transform_indices = @transform_5, window_bounds = array<i64: 2, 128, 128>}, {pipeline_mode = #tpu.pipeline_mode<synchronous>, transform_indices = @transform_6, window_bounds = array<i64: 2, 128, 128>}, {pipeline_mode = #tpu.pipeline_mode<synchronous>, transform_indices = @transform_7, window_bounds = array<i64: 2, 2, 128>}, {transform_indices = @transform_8, window_bounds = array<i64: 8, 128>}]} {
    %c0 = arith.constant 0 : index
    %c0_0 = arith.constant 0 : index
    %c0_1 = arith.constant 0 : index
    %0 = vector.load %arg1[%c0, %c0_0, %c0_1] : memref<8x16x128xf32, #tpu.memory_space<vmem>>, vector<8x16x128xf32>
    %1 = vector.shape_cast %0 : vector<8x16x128xf32> to vector<128x128xf32>
    %c0_2 = arith.constant 0 : index
    %c0_3 = arith.constant 0 : index
    %c0_4 = arith.constant 0 : index
    %2 = vector.load %arg2[%c0_2, %c0_3, %c0_4] : memref<8x16x128xf32, #tpu.memory_space<vmem>>, vector<8x16x128xf32>
    %c0_5 = arith.constant 0 : index
    %c0_6 = arith.constant 0 : index
    %c0_7 = arith.constant 0 : index
    %c0_8 = arith.constant 0 : index
    %3 = vector.load %arg3[%c0_5, %c0_6, %c0_7, %c0_8] : memref<8x2x16x16xf32, #tpu.memory_space<vmem>>, vector<8x2x16x16xf32>
    %c0_9 = arith.constant 0 : index
    %c0_10 = arith.constant 0 : index
    %c0_11 = arith.constant 0 : index
    %4 = vector.load %arg4[%c0_9, %c0_10, %c0_11] : memref<8x2x128xf32, #tpu.memory_space<vmem>>, vector<8x2x128xf32>
    %c0_12 = arith.constant 0 : index
    %c0_13 = arith.constant 0 : index
    %c0_14 = arith.constant 0 : index
    %5 = vector.load %arg8[%c0_12, %c0_13, %c0_14] : memref<2x2x128xf32, #tpu.memory_space<vmem>>, vector<2x2x128xf32>
    %c0_15 = arith.constant 0 : index
    %c0_16 = arith.constant 0 : index
    %c0_17 = arith.constant 0 : index
    %6 = vector.load %arg5[%c0_15, %c0_16, %c0_17] : memref<2x128x128xf32, #tpu.memory_space<vmem>>, vector<1x128x128xf32>
    %7 = vector.shape_cast %6 : vector<1x128x128xf32> to vector<128x128xf32>
    %c0_18 = arith.constant 0 : index
    %c0_19 = arith.constant 0 : index
    %c0_20 = arith.constant 0 : index
    %8 = vector.load %arg6[%c0_18, %c0_19, %c0_20] : memref<2x128x128xf32, #tpu.memory_space<vmem>>, vector<1x128x128xf32>
    %9 = vector.shape_cast %8 : vector<1x128x128xf32> to vector<128x128xf32>
    %c0_21 = arith.constant 0 : index
    %c0_22 = arith.constant 0 : index
    %c0_23 = arith.constant 0 : index
    %10 = vector.load %arg7[%c0_21, %c0_22, %c0_23] : memref<2x128x128xf32, #tpu.memory_space<vmem>>, vector<1x128x128xf32>
    %11 = vector.shape_cast %10 : vector<1x128x128xf32> to vector<128x128xf32>
    %cst = arith.constant dense<0.000000e+00> : vector<128x128xf32>
    %12 = tpu.matmul %1, %7, %cst {dimension_numbers = #tpu.dot_dimension_numbers<[1], [0], [0], [1], [0, 0, 1, 1], [], []>} : vector<128x128xf32>, vector<128x128xf32>, vector<128x128xf32> -> vector<128x128xf32>
    %13 = vector.extract_strided_slice %5 {offsets = [0, 0, 0], sizes = [1, 1, 128], strides = [1, 1, 1]} : vector<2x2x128xf32> to vector<1x1x128xf32>
    %14 = vector.shape_cast %13 : vector<1x1x128xf32> to vector<1x128xf32>
    %15 = vector.broadcast %14 : vector<1x128xf32> to vector<128x128xf32>
    %16 = arith.addf %12, %15 : vector<128x128xf32>
    %cst_24 = arith.constant 0.000000e+00 : f32
    %17 = vector.broadcast %cst_24 : f32 to vector<128x128xf32>
    %18 = arith.maximumf %16, %17 : vector<128x128xf32>
    %19 = vector.shape_cast %18 : vector<128x128xf32> to vector<8x16x128xf32>
    %20 = vector.shape_cast %2 : vector<8x16x128xf32> to vector<128x128xf32>
    %cst_25 = arith.constant dense<0.000000e+00> : vector<128x128xf32>
    %21 = tpu.matmul %20, %9, %cst_25 {dimension_numbers = #tpu.dot_dimension_numbers<[1], [0], [0], [1], [0, 0, 1, 1], [], []>} : vector<128x128xf32>, vector<128x128xf32>, vector<128x128xf32> -> vector<128x128xf32>
    %22 = vector.extract_strided_slice %5 {offsets = [0, 1, 0], sizes = [1, 1, 128], strides = [1, 1, 1]} : vector<2x2x128xf32> to vector<1x1x128xf32>
    %23 = vector.shape_cast %22 : vector<1x1x128xf32> to vector<1x128xf32>
    %24 = vector.broadcast %23 : vector<1x128xf32> to vector<128x128xf32>
    %25 = arith.addf %21, %24 : vector<128x128xf32>
    %cst_26 = arith.constant 0.000000e+00 : f32
    %26 = vector.broadcast %cst_26 : f32 to vector<128x128xf32>
    %27 = arith.maximumf %25, %26 : vector<128x128xf32>
    %28 = vector.shape_cast %27 : vector<128x128xf32> to vector<8x16x128xf32>
    %29 = vector.extract_strided_slice %3 {offsets = [0, 0, 0, 0], sizes = [8, 1, 16, 16], strides = [1, 1, 1, 1]} : vector<8x2x16x16xf32> to vector<8x1x16x16xf32>
    %30 = vector.shape_cast %29 : vector<8x1x16x16xf32> to vector<8x16x16xf32>
    %cst_27 = arith.constant dense<0.000000e+00> : vector<8x16x128xf32>
    %31 = tpu.matmul %30, %19, %cst_27 {dimension_numbers = #tpu.dot_dimension_numbers<[2], [1], [1], [2], [0, 0, 0, 1, 1, 2], [0], [0]>} : vector<8x16x16xf32>, vector<8x16x128xf32>, vector<8x16x128xf32> -> vector<8x16x128xf32>
    %32 = arith.mulf %31, %28 : vector<8x16x128xf32>
    %cst_28 = arith.constant dense<0.000000e+00> : vector<8x128xf32>
    %33 = vector.multi_reduction <add>, %32, %cst_28 [1] : vector<8x16x128xf32> to vector<8x128xf32>
    %cst_29 = arith.constant dense<0.000000e+00> : vector<8x128xf32>
    %34 = tpu.matmul %33, %11, %cst_29 {dimension_numbers = #tpu.dot_dimension_numbers<[1], [0], [0], [1], [0, 0, 1, 1], [], []>} : vector<8x128xf32>, vector<128x128xf32>, vector<8x128xf32> -> vector<8x128xf32>
    %35 = vector.extract_strided_slice %4 {offsets = [0, 0, 0], sizes = [8, 1, 128], strides = [1, 1, 1]} : vector<8x2x128xf32> to vector<8x1x128xf32>
    %36 = vector.shape_cast %35 : vector<8x1x128xf32> to vector<8x128xf32>
    %37 = arith.addf %34, %36 : vector<8x128xf32>
    %38 = vector.shape_cast %37 : vector<8x128xf32> to vector<8x1x128xf32>
    %39 = vector.broadcast %38 : vector<8x1x128xf32> to vector<8x16x128xf32>
    %40 = arith.addf %2, %39 : vector<8x16x128xf32>
    %c1 = arith.constant 1 : index
    %c0_30 = arith.constant 0 : index
    %c0_31 = arith.constant 0 : index
    %41 = vector.load %arg5[%c1, %c0_30, %c0_31] : memref<2x128x128xf32, #tpu.memory_space<vmem>>, vector<1x128x128xf32>
    %42 = vector.shape_cast %41 : vector<1x128x128xf32> to vector<128x128xf32>
    %c1_32 = arith.constant 1 : index
    %c0_33 = arith.constant 0 : index
    %c0_34 = arith.constant 0 : index
    %43 = vector.load %arg6[%c1_32, %c0_33, %c0_34] : memref<2x128x128xf32, #tpu.memory_space<vmem>>, vector<1x128x128xf32>
    %44 = vector.shape_cast %43 : vector<1x128x128xf32> to vector<128x128xf32>
    %c1_35 = arith.constant 1 : index
    %c0_36 = arith.constant 0 : index
    %c0_37 = arith.constant 0 : index
    %45 = vector.load %arg7[%c1_35, %c0_36, %c0_37] : memref<2x128x128xf32, #tpu.memory_space<vmem>>, vector<1x128x128xf32>
    %46 = vector.shape_cast %45 : vector<1x128x128xf32> to vector<128x128xf32>
    %cst_38 = arith.constant dense<0.000000e+00> : vector<128x128xf32>
    %47 = tpu.matmul %1, %42, %cst_38 {dimension_numbers = #tpu.dot_dimension_numbers<[1], [0], [0], [1], [0, 0, 1, 1], [], []>} : vector<128x128xf32>, vector<128x128xf32>, vector<128x128xf32> -> vector<128x128xf32>
    %48 = vector.extract_strided_slice %5 {offsets = [1, 0, 0], sizes = [1, 1, 128], strides = [1, 1, 1]} : vector<2x2x128xf32> to vector<1x1x128xf32>
    %49 = vector.shape_cast %48 : vector<1x1x128xf32> to vector<1x128xf32>
    %50 = vector.broadcast %49 : vector<1x128xf32> to vector<128x128xf32>
    %51 = arith.addf %47, %50 : vector<128x128xf32>
    %cst_39 = arith.constant 0.000000e+00 : f32
    %52 = vector.broadcast %cst_39 : f32 to vector<128x128xf32>
    %53 = arith.maximumf %51, %52 : vector<128x128xf32>
    %54 = vector.shape_cast %53 : vector<128x128xf32> to vector<8x16x128xf32>
    %55 = vector.shape_cast %40 : vector<8x16x128xf32> to vector<128x128xf32>
    %cst_40 = arith.constant dense<0.000000e+00> : vector<128x128xf32>
    %56 = tpu.matmul %55, %44, %cst_40 {dimension_numbers = #tpu.dot_dimension_numbers<[1], [0], [0], [1], [0, 0, 1, 1], [], []>} : vector<128x128xf32>, vector<128x128xf32>, vector<128x128xf32> -> vector<128x128xf32>
    %57 = vector.extract_strided_slice %5 {offsets = [1, 1, 0], sizes = [1, 1, 128], strides = [1, 1, 1]} : vector<2x2x128xf32> to vector<1x1x128xf32>
    %58 = vector.shape_cast %57 : vector<1x1x128xf32> to vector<1x128xf32>
    %59 = vector.broadcast %58 : vector<1x128xf32> to vector<128x128xf32>
    %60 = arith.addf %56, %59 : vector<128x128xf32>
    %cst_41 = arith.constant 0.000000e+00 : f32
    %61 = vector.broadcast %cst_41 : f32 to vector<128x128xf32>
    %62 = arith.maximumf %60, %61 : vector<128x128xf32>
    %63 = vector.shape_cast %62 : vector<128x128xf32> to vector<8x16x128xf32>
    %64 = vector.extract_strided_slice %3 {offsets = [0, 1, 0, 0], sizes = [8, 1, 16, 16], strides = [1, 1, 1, 1]} : vector<8x2x16x16xf32> to vector<8x1x16x16xf32>
    %65 = vector.shape_cast %64 : vector<8x1x16x16xf32> to vector<8x16x16xf32>
    %cst_42 = arith.constant dense<0.000000e+00> : vector<8x16x128xf32>
    %66 = tpu.matmul %65, %54, %cst_42 {dimension_numbers = #tpu.dot_dimension_numbers<[2], [1], [1], [2], [0, 0, 0, 1, 1, 2], [0], [0]>} : vector<8x16x16xf32>, vector<8x16x128xf32>, vector<8x16x128xf32> -> vector<8x16x128xf32>
    %67 = arith.mulf %66, %63 : vector<8x16x128xf32>
    %cst_43 = arith.constant dense<0.000000e+00> : vector<8x128xf32>
    %68 = vector.multi_reduction <add>, %67, %cst_43 [1] : vector<8x16x128xf32> to vector<8x128xf32>
    %cst_44 = arith.constant dense<0.000000e+00> : vector<8x128xf32>
    %69 = tpu.matmul %68, %46, %cst_44 {dimension_numbers = #tpu.dot_dimension_numbers<[1], [0], [0], [1], [0, 0, 1, 1], [], []>} : vector<8x128xf32>, vector<128x128xf32>, vector<8x128xf32> -> vector<8x128xf32>
    %70 = vector.extract_strided_slice %4 {offsets = [0, 1, 0], sizes = [8, 1, 128], strides = [1, 1, 1]} : vector<8x2x128xf32> to vector<8x1x128xf32>
    %71 = vector.shape_cast %70 : vector<8x1x128xf32> to vector<8x128xf32>
    %72 = arith.addf %69, %71 : vector<8x128xf32>
    %73 = vector.shape_cast %72 : vector<8x128xf32> to vector<8x1x128xf32>
    %74 = vector.broadcast %73 : vector<8x1x128xf32> to vector<8x16x128xf32>
    %75 = arith.addf %40, %74 : vector<8x16x128xf32>
    %cst_45 = arith.constant dense<0.000000e+00> : vector<8x128xf32>
    %76 = vector.multi_reduction <add>, %75, %cst_45 [1] : vector<8x16x128xf32> to vector<8x128xf32>
    %c0_46 = arith.constant 0 : index
    %c0_47 = arith.constant 0 : index
    %77 = vector.load %arg9[%c0_46, %c0_47] : memref<8x128xf32, #tpu.memory_space<vmem>>, vector<8x128xf32>
    tpu.vector_store %arg9[%c0_46, %c0_47], %76 {strides = array<i32>} : memref<8x128xf32, #tpu.memory_space<vmem>>, vector<8x128xf32>,
    return
  }
  func.func @transform_0(%arg0: i32) -> (i32, i32, i32) {
    %c0_i32 = arith.constant 0 : i32
    %c0_i32_0 = arith.constant 0 : i32
    %c0_i32_1 = arith.constant 0 : i32
    return %arg0, %c0_i32, %c0_i32_0 : i32, i32, i32
  }
  func.func @transform_1(%arg0: i32) -> (i32, i32, i32) {
    %c0_i32 = arith.constant 0 : i32
    %c0_i32_0 = arith.constant 0 : i32
    %c0_i32_1 = arith.constant 0 : i32
    return %arg0, %c0_i32, %c0_i32_0 : i32, i32, i32
  }
  func.func @transform_2(%arg0: i32) -> (i32, i32, i32, i32) {
    %c0_i32 = arith.constant 0 : i32
    %c0_i32_0 = arith.constant 0 : i32
    %c0_i32_1 = arith.constant 0 : i32
    %c0_i32_2 = arith.constant 0 : i32
    return %arg0, %c0_i32, %c0_i32_0, %c0_i32_1 : i32, i32, i32, i32
  }
  func.func @transform_3(%arg0: i32) -> (i32, i32, i32) {
    %c0_i32 = arith.constant 0 : i32
    %c0_i32_0 = arith.constant 0 : i32
    %c0_i32_1 = arith.constant 0 : i32
    return %arg0, %c0_i32, %c0_i32_0 : i32, i32, i32
  }
  func.func @transform_4(%arg0: i32) -> (i32, i32, i32) {
    %c0_i32 = arith.constant 0 : i32
    %c0_i32_0 = arith.constant 0 : i32
    %c0_i32_1 = arith.constant 0 : i32
    %c0_i32_2 = arith.constant 0 : i32
    return %c0_i32, %c0_i32_0, %c0_i32_1 : i32, i32, i32
  }
  func.func @transform_5(%arg0: i32) -> (i32, i32, i32) {
    %c0_i32 = arith.constant 0 : i32
    %c0_i32_0 = arith.constant 0 : i32
    %c0_i32_1 = arith.constant 0 : i32
    %c0_i32_2 = arith.constant 0 : i32
    return %c0_i32, %c0_i32_0, %c0_i32_1 : i32, i32, i32
  }
  func.func @transform_6(%arg0: i32) -> (i32, i32, i32) {
    %c0_i32 = arith.constant 0 : i32
    %c0_i32_0 = arith.constant 0 : i32
    %c0_i32_1 = arith.constant 0 : i32
    %c0_i32_2 = arith.constant 0 : i32
    return %c0_i32, %c0_i32_0, %c0_i32_1 : i32, i32, i32
  }
  func.func @transform_7(%arg0: i32) -> (i32, i32, i32) {
    %c0_i32 = arith.constant 0 : i32
    %c0_i32_0 = arith.constant 0 : i32
    %c0_i32_1 = arith.constant 0 : i32
    %c0_i32_2 = arith.constant 0 : i32
    return %c0_i32, %c0_i32_0, %c0_i32_1 : i32, i32, i32
  }
  func.func @transform_8(%arg0: i32) -> (i32, i32) {
    %c0_i32 = arith.constant 0 : i32
    %c0_i32_0 = arith.constant 0 : i32
    return %arg0, %c0_i32 : i32, i32
  }
}

</mosaic_0001>

<bundles_post_ra>
// kernel: tpu_custom_call.1
= control target key start
LH: loop header
LB: loop body
LE: loop exit
PB: predicated region body
PF: predicated region fallthrough
CT: control target
= control target key end

     0   :  { %s5820_s0 = inlined_call_operand.hbm [shape: f32[16,16,128], index: 0, kind: input, shape index: {}]   ;;  %s5821_s1 = inlined_call_operand.hbm [shape: f32[16,16,128], index: 1, kind: input, shape index: {}]   ;;  %s5822_s2 = inlined_call_operand.hbm [shape: f32[16,2,16,16], index: 2, kind: input, shape index: {}]   ;;  %s5823_s3 = inlined_call_operand.hbm [shape: f32[16,2,128], index: 3, kind: input, shape index: {}]   ;;  %s5824_s4 = inlined_call_operand.hbm [shape: f32[2,128,128], index: 4, kind: input, shape index: {}]   ;;  %s5825_s5 = inlined_call_operand.hbm [shape: f32[2,128,128], index: 5, kind: input, shape index: {}]   ;;  %s5826_s6 = inlined_call_operand.hbm [shape: f32[2,128,128], index: 6, kind: input, shape index: {}]   ;;  %s5827_s7 = inlined_call_operand.vmem [shape: f32[2,2,128], index: 7, kind: input, shape index: {}]   ;;  %s5828_s8 = inlined_call_operand.hbm [shape: f32[16,128], index: 8, kind: output, shape index: {}]  }
   0x1   :  { %5848 = sst [smem:[#allocation26_spill]] %s5821_s1 }
   0x2   :  { %5849 = sst [smem:[#allocation27_spill]] %s5824_s4 }
   0x3   :  { %5850 = sst [smem:[#allocation28_spill]] %s5828_s8 }
   0x4   :  { %13 = vsyncpa [#allocation3], 0 }
   0x5   :  { %15 = vsyncpa [#allocation3 + $0x1], 0 }
   0x6   :  { %16 = vsyncpa [#allocation6], 0 }
   0x7   :  { %18 = vsyncpa [#allocation6 + $0x1], 0 }
   0x8   :  { %19 = vsyncpa [#allocation9], 0 }
   0x9   :  { %21 = vsyncpa [#allocation9 + $0x1], 0 }
   0xa   :  { %22 = vsyncpa [#allocation12], 0 }
   0xb   :  { %23 = vsyncpa [#allocation4], 0 }
   0xc   :  { %25 = vsyncpa [#allocation4 + $0x1], 0  ;;  %s4855_s27 = smov 0   ;;  %s4857_s28 = smov 0  }
   0xd   :  { %s4859_s29 = smov 0   ;;  %s4861_s30 = smov 0  }
   0xe LB: > { %5851 = sst [smem:[#allocation21_spill]] %s4780_s27  ;;  %s4876_s9 = sadd.s32 4294967295, %s4792_s30   ;;  %s4792_s30 = sphi %s4861_s30, %s5888_s30   ;;  %s4788_s29 = sphi %s4859_s29, %s5892_s29   ;;  %s4784_s28 = sphi %s4857_s28, %s5891_s28   ;;  %s4780_s27 = sphi %s4855_s27, %s5890_s27  }
   0xf   : > { %s3445_s10 = sadd.s32 4294967294, %s4792_s30   ;;  %s4880_s11 = sadd.s32 1, %s4792_s30  }
  0x10   : > { %5852 = sst [smem:[#allocation22_spill]] %s4880_s11  ;;  %s38_s12 = sadd.s32 1, %s4788_s29 }
  0x11   : > { %s35_s13 = ssub.s32 %s4792_s30, %s4880_s11  ;;  %p45_p0 = scmp.ne.s32.totalorder %s4788_s29, %s4784_s28 }
  0x12   : > { %p36_p1 = scmp.eq.s32.totalorder %s35_s13, 0  ;;  %p46_p2 = scmp.eq.s32.totalorder %s4792_s30, 0 }
  0x13   : > { %p51_p3 = scmp.ne.s32.totalorder %s4784_s28, %s4780_s27  ;;  %p5831_p4 = scmp.eq.s32.totalorder %s4876_s9, 0 }
  0x14   : > { %s4892_s14 = scalar_select %p36_p1, %s4788_s29, %s38_s12  }
  0x15   : > { %p4894_p5 = por %p46_p2, %p45_p0  ;;  %p4900_p6 = por %p5831_p4, %p51_p3 }
  0x16   : > { %5853 = sst [smem:[#allocation23_spill]] %s4892_s14  ;;  %p237_p7 = scmp.eq.s32.totalorder %s4876_s9, 1 }
  0x17   : > { %s5854_s15 = scalar_select %p4894_p5, 1, 0 }
  0x18   : > { %s5855_s16 = scalar_select %p4900_p6, 1, 0 }
  0x19   : > { %p243_p8 = scmp.eq.s32.totalorder %s3445_s10, 1  ;;  %p3446_p9 = scmp.ge.s32.totalorder %s4792_s30, 1 }
  0x1a   : > { %p250_p10 = scmp.lt.s32.totalorder %s4792_s30, 3  ;;  %p4907_p11 = por %p237_p7, %p45_p0 }
  0x1b   : > { %p4911_p12 = por %p243_p8, %p51_p3  ;;  %s4794_s20 = smov [#allocation10]  }
  0x1c   : > { %s5856_s17 = scalar_select %p4907_p11, 1, 0 }
  0x1d   : > { %s5858_s18 = scalar_select %p4911_p12, 1, 0 }
  0x1e   : > { %5857 = sst [smem:[#allocation24_spill]] %s5856_s17  ;;  %p4915_p13 = pnand %p3446_p9, %p250_p10 }
  0x1f   : > { %5859 = sst [smem:[#allocation25_spill]] %s5858_s18  ;;  %s262_s21 = sshll.u32 %s4794_s20, 4  ;;  %s263_s21 = int_to_ptr.vmem [resolvable:$true] %s262_s21 }
  0x20   : > { %s5860_s19 = scalar_select %p4915_p13, 1, 0 }
  0x21   : > { %p4412_p1 = pneg %p4915_p13  ;;  %s4795_s23 = smov [#allocation11]  }
  0x22   : > { %s275_s24 = sshll.u32 %s4795_s23, 4  ;;  %s5862_s4 = sld [smem:[#allocation27_spill]]  ;;  %s276_s24 = int_to_ptr.vmem [resolvable:$true] %s275_s24 }
  0x23   : > { %p4923_p2 = pnand %p4412_p1, %p5831_p4 }
  0x25   : > { %s5861_s22 = scalar_select %p4923_p2, 1, 0 }
  0x26   : > { %p4937_p8 = pneg %p4923_p2 }
  0x28   : > { %s4506_s10 = scalar_lea.hbm %s5862_s4, 4096 }
  0x29   : > { %p4507_p7 = scmp.ne.s32.totalorder %s5862_s4, %s4506_s10  ;;  %p4513_p1 = scmp.lt.u32.totalorder %s4506_s10, %s5862_s4 }
  0x2a   : > { %s5863_s20 = scalar_select %p4937_p8, 1, 0 }
  0x2b   : > { %p4509_p9 = pnand %p4937_p8, %p4507_p7 }
  0x2d   : > { %p4510_p10 = pneg %p4509_p9 }
  0x2f   : > { %p4515_p0 = pnand %p4513_p1, %p4510_p10 }
  0x31   : > { %4518 = shalt.err (!%p4515_p0)
}
  0x32   : > { %s4519_s23 = scalar_lea.vmem %s263_s21, 4096  ;;  %p4527_p11 = scmp.lt.s32.totalorder %s263_s21, %s263_s21 }
  0x33   : > { %p4520_p4 = scmp.ne.s32.totalorder %s263_s21, %s4519_s23  ;;  %p4528_p6 = scmp.lt.s32.totalorder %s4519_s23, %s4519_s23 }
  0x35   : > { %p4522_p3 = pnand %p4520_p4, %p4937_p8  ;;  %p4529_p13 = por %p4528_p6, %p4527_p11 }
  0x37   : > { %p4523_p12 = pneg %p4522_p3 }
  0x39   : > { %p4530_p5 = pnand %p4529_p13, %p4523_p12 }
  0x3b   : > { %4533 = shalt.err (!%p4530_p5)
}
  0x3c   : > { %s4796_s25 = smov 128   ;;  %s4797_s26 = smov 8  }
  0x3d   : > { %4415 = dma.hbm_to_vmem [thread:$0]  (!%p4923_p2), %s5862_s4, 4096, %s263_s21, [#allocation9], %s4796_s25, %s4796_s25, %s4797_s26  }
  0x3e   : > { %s4957_s10 = sand.u32 1, %s4788_s29   ;;  %s4534_s23 = scalar_lea.hbm %s5825_s5, 4096 }
  0x3f   : > { %p4535_p4 = scmp.ne.s32.totalorder %s5825_s5, %s4534_s23  ;;  %p4541_p11 = scmp.lt.u32.totalorder %s4534_s23, %s5825_s5 }
  0x41   : > { %p4537_p5 = pnand %p4535_p4, %p4937_p8 }
  0x43   : > { %p4538_p6 = pneg %p4537_p5 }
  0x45   : > { %p4543_p12 = pnand %p4541_p11, %p4538_p6 }
  0x47   : > { %4546 = shalt.err (!%p4543_p12)
}
  0x48   : > { %s4547_s21 = scalar_lea.vmem %s276_s24, 4096  ;;  %p4555_p7 = scmp.lt.s32.totalorder %s276_s24, %s276_s24 }
  0x49   : > { %p4548_p13 = scmp.ne.s32.totalorder %s276_s24, %s4547_s21  ;;  %p4556_p9 = scmp.lt.s32.totalorder %s4547_s21, %s4547_s21 }
  0x4b   : > { %p4550_p0 = pnand %p4548_p13, %p4937_p8  ;;  %p4557_p10 = por %p4556_p9, %p4555_p7 }
  0x4d   : > { %p4551_p3 = pneg %p4550_p0 }
  0x4f   : > { %p4558_p1 = pnand %p4557_p10, %p4551_p3 }
  0x51   : > { %4561 = shalt.err (!%p4558_p1)
}
  0x52   : > { %4418 = dma.hbm_to_vmem [thread:$0]  (!%p4923_p2), %s5825_s5, 4096, %s276_s24, [#allocation12], %s4796_s25, %s4796_s25, %s4797_s26  }
  0x53   : > { %s5840_s17 = sshll.u32 %s4957_s10, 7  ;;  %s5841_s18 = sshll.u32 %s4792_s30, 11 }
  0x54   : > { %p5864_p4 = scmp.ne.s32.totalorder %s5854_s15, 0  ;;  %p5865_p5 = scmp.lt.s32.totalorder %s4792_s30, 2 }
  0x55   : > { %s5842_s14 = sand.u32 1, %s4792_s30   ;;  %s5867_s1 = sld [smem:[#allocation26_spill]] }
  0x56   : > { %p4986_p6 = pnand %p5865_p5, %p5864_p4  ;;  %s331_s24 = scalar_lea.vmem [#allocation5], %s5840_s17 }
  0x57   : > { %s339_s15 = sshll.u32 %s331_s24, 4  ;;  %s5004_s21 = scalar_lea.sflag [#allocation6], %s5842_s14  ;;  %s5000_s15 = int_to_ptr.vmem [resolvable:$true] %s339_s15 }
  0x58   : > { %s5866_s11 = scalar_select %p4986_p6, 1, 0 }
  0x59   : > { %p5010_p12 = pneg %p4986_p6 }
  0x5b   : > { %s4996_s23 = scalar_lea.hbm %s5867_s1, %s5841_s18  ;;  %s4567_s24 = scalar_lea.hbm %s5867_s1, 4096 }
  0x5c   : > { %s4562_s8 = scalar_lea.hbm %s4996_s23, 2048  ;;  %p4568_p3 = scmp.lt.u32.totalorder %s4996_s23, %s5867_s1 }
  0x5d   : > { %p4563_p11 = scmp.ne.s32.totalorder %s4996_s23, %s4562_s8  ;;  %p4569_p7 = scmp.lt.u32.totalorder %s4567_s24, %s4562_s8 }
  0x5e   : > { %p4571_p10 = scmp.lt.u32.totalorder %s4562_s8, %s4996_s23 }
  0x5f   : > { %p4565_p13 = pnand %p5010_p12, %p4563_p11  ;;  %p4570_p9 = por %p4569_p7, %p4568_p3 }
  0x61   : > { %p4566_p0 = pneg %p4565_p13  ;;  %p4572_p1 = por %p4571_p10, %p4570_p9 }
  0x63   : > { %p4573_p4 = pnand %p4572_p1, %p4566_p0 }
  0x65   : > { %4576 = shalt.err (!%p4573_p4)
}
  0x66   : > { %s4577_s14 = scalar_lea.vmem %s5000_s15, 2048  ;;  %s4798_s12 = smov [#allocation5]  }
  0x67   : > { %p4578_p5 = scmp.ne.s32.totalorder %s5000_s15, %s4577_s14  ;;  %s4582_s13 = sshll.u32 %s4798_s12, 4  ;;  %s4583_s13 = int_to_ptr.vmem [resolvable:$false] %s4582_s13 }
  0x68   : > { %s4584_s17 = scalar_lea.vmem %s4583_s13, 4096  ;;  %p4585_p2 = scmp.lt.s32.totalorder %s5000_s15, %s4583_s13 }
  0x69   : > { %p4580_p11 = pnand %p4578_p5, %p5010_p12  ;;  %p4586_p8 = scmp.lt.s32.totalorder %s4584_s17, %s4577_s14 }
  0x6b   : > { %p4581_p13 = pneg %p4580_p11  ;;  %p4587_p3 = por %p4586_p8, %p4585_p2 }
  0x6d   : > { %p4588_p7 = pnand %p4587_p3, %p4581_p13 }
  0x6f   : > { %4591 = shalt.err (!%p4588_p7)
}
  0x70   : > { %4428 = dma.hbm_to_vmem [thread:$0]  (!%p4986_p6), %s4996_s23, 2048, %s5000_s15, %s5004_s21, %s4796_s25, %s4796_s25, %s4797_s26  }
  0x71   : > { %s4799_s18 = smov [#allocation13]   ;;  %s4592_s14 = scalar_lea.hbm %s5826_s6, 4096 }
  0x72   : > { %s288_s8 = sshll.u32 %s4799_s18, 4  ;;  %p4593_p2 = scmp.ne.s32.totalorder %s5826_s6, %s4592_s14  ;;  %s289_s8 = int_to_ptr.vmem [resolvable:$true] %s288_s8 }
  0x73   : > { %p5869_p8 = scmp.ne.s32.totalorder %s5863_s20, 0  ;;  %p4599_p10 = scmp.lt.u32.totalorder %s4592_s14, %s5826_s6 }
  0x75   : > { %p4595_p0 = pnand %p4593_p2, %p5869_p8 }
  0x77   : > { %p4596_p9 = pneg %p4595_p0 }
  0x79   : > { %p4601_p1 = pnand %p4599_p10, %p4596_p9 }
  0x7b   : > { %4604 = shalt.err (!%p4601_p1)
}
  0x7c   : > { %s4605_s23 = scalar_lea.vmem %s289_s8, 4096  ;;  %p4613_p13 = scmp.lt.s32.totalorder %s289_s8, %s289_s8 }
  0x7d   : > { %p4606_p4 = scmp.ne.s32.totalorder %s289_s8, %s4605_s23  ;;  %p4614_p3 = scmp.lt.s32.totalorder %s4605_s23, %s4605_s23 }
  0x7f   : > { %p4608_p5 = pnand %p4606_p4, %p5869_p8  ;;  %p4615_p7 = por %p4614_p3, %p4613_p13 }
  0x81   : > { %p4609_p11 = pneg %p4608_p5 }
  0x83   : > { %p4616_p6 = pnand %p4615_p7, %p4609_p11 }
  0x85   : > { %4619 = shalt.err (!%p4616_p6)
}
  0x86   : > { %p5870_p2 = scmp.ne.s32.totalorder %s5861_s22, 0  ;;  %s5871_s20 = sshll.u32 %s4792_s30, 11 }
  0x87   : > { %s5063_s24 = scalar_lea.hbm %s5820_s0, %s5871_s20  ;;  %s5872_s12 = sshll.u32 %s4957_s10, 7 }
  0x88   : > { %4421 = dma.hbm_to_vmem [thread:$0]  (!%p5870_p2), %s5826_s6, 4096, %s289_s8, [#allocation12], %s4796_s25, %s4796_s25, %s4797_s26  }
  0x89   : > { %s309_s22 = scalar_lea.vmem [#allocation2], %s5872_s12  ;;  %s3459_s13 = sshll.u32 %s4957_s10, 8 }
  0x8a   : > { %s317_s14 = sshll.u32 %s309_s22, 4  ;;  %s306_s17 = scalar_lea.sflag [#allocation3], %s4957_s10  ;;  %s5067_s14 = int_to_ptr.vmem [resolvable:$true] %s317_s14 }
  0x8b   : > { %s4620_s23 = scalar_lea.hbm %s5063_s24, 2048  ;;  %s4625_s4 = scalar_lea.hbm %s5820_s0, 4096 }
  0x8c   : > { %p4621_p6 = scmp.ne.s32.totalorder %s5063_s24, %s4620_s23  ;;  %p4626_p9 = scmp.lt.u32.totalorder %s5063_s24, %s5820_s0 }
  0x8d   : > { %p4627_p10 = scmp.lt.u32.totalorder %s4625_s4, %s4620_s23  ;;  %p4629_p4 = scmp.lt.u32.totalorder %s4620_s23, %s5063_s24 }
  0x8e   : > { %p4623_p8 = pnand %p4621_p6, %p5010_p12 }
  0x8f   : > { %p4628_p1 = por %p4627_p10, %p4626_p9 }
  0x90   : > { %p4624_p0 = pneg %p4623_p8 }
  0x91   : > { %p4630_p5 = por %p4629_p4, %p4628_p1 }
  0x93   : > { %p4631_p11 = pnand %p4630_p5, %p4624_p0 }
  0x95   : > { %4634 = shalt.err (!%p4631_p11)
}
  0x96   : > { %s4635_s18 = scalar_lea.vmem %s5067_s14, 2048  ;;  %s4800_s12 = smov [#allocation2]  }
  0x97   : > { %p4636_p13 = scmp.ne.s32.totalorder %s5067_s14, %s4635_s18  ;;  %s4640_s22 = sshll.u32 %s4800_s12, 4  ;;  %s4641_s22 = int_to_ptr.vmem [resolvable:$false] %s4640_s22 }
  0x98   : > { %s4642_s8 = scalar_lea.vmem %s4641_s22, 4096  ;;  %p4643_p2 = scmp.lt.s32.totalorder %s5067_s14, %s4641_s22 }
  0x99   : > { %p4638_p3 = pnand %p4636_p13, %p5010_p12  ;;  %p4644_p6 = scmp.lt.s32.totalorder %s4642_s8, %s4635_s18 }
  0x9b   : > { %p4639_p7 = pneg %p4638_p3  ;;  %p4645_p8 = por %p4644_p6, %p4643_p2 }
  0x9d   : > { %p4646_p9 = pnand %p4645_p8, %p4639_p7 }
  0x9f   : > { %4649 = shalt.err (!%p4646_p9)
}
  0xa0   : > { %p5873_p0 = scmp.ne.s32.totalorder %s5866_s11, 0  ;;  %s3516_s23 = sshll.u32 %s4792_s30, 12 }
  0xa1   : > { %s5101_s20 = scalar_lea.hbm %s5822_s2, %s3516_s23  ;;  %s353_s15 = scalar_lea.vmem [#allocation7], %s3459_s13 }
  0xa2   : > { %4425 = dma.hbm_to_vmem [thread:$0]  (!%p5873_p0), %s5063_s24, 2048, %s5067_s14, %s306_s17, %s4796_s25, %s4796_s25, %s4797_s26  }
  0xa3   : > { %s361_s18 = sshll.u32 %s353_s15, 4  ;;  %s3463_s12 = sshll.u32 %s4957_s10, 4  ;;  %s5105_s18 = int_to_ptr.vmem [resolvable:$true] %s361_s18 }
  0xa4   : > { %s4650_s22 = scalar_lea.hbm %s5101_s20, 4096  ;;  %s4655_s17 = scalar_lea.hbm %s5822_s2, 8192 }
  0xa5   : > { %p4651_p10 = scmp.ne.s32.totalorder %s5101_s20, %s4650_s22  ;;  %p4656_p5 = scmp.lt.u32.totalorder %s5101_s20, %s5822_s2 }
  0xa6   : > { %p4657_p11 = scmp.lt.u32.totalorder %s4655_s17, %s4650_s22  ;;  %p4659_p3 = scmp.lt.u32.totalorder %s4650_s22, %s5101_s20 }
  0xa7   : > { %p4653_p1 = pnand %p4651_p10, %p5010_p12 }
  0xa8   : > { %p4658_p13 = por %p4657_p11, %p4656_p5 }
  0xa9   : > { %p4654_p4 = pneg %p4653_p1 }
  0xaa   : > { %p4660_p7 = por %p4659_p3, %p4658_p13 }
  0xac   : > { %p4661_p2 = pnand %p4660_p7, %p4654_p4 }
  0xae   : > { %4664 = shalt.err (!%p4661_p2)
}
  0xaf   : > { %s4665_s13 = scalar_lea.vmem %s5105_s18, 4096  ;;  %s4801_s1 = smov [#allocation7]  }
  0xb0   : > { %p4666_p6 = scmp.ne.s32.totalorder %s5105_s18, %s4665_s13  ;;  %s4670_s4 = sshll.u32 %s4801_s1, 4  ;;  %s4671_s4 = int_to_ptr.vmem [resolvable:$false] %s4670_s4 }
  0xb1   : > { %s4672_s15 = scalar_lea.vmem %s4671_s4, 8192  ;;  %p4673_p10 = scmp.lt.s32.totalorder %s5105_s18, %s4671_s4 }
  0xb2   : > { %p4668_p8 = pnand %p4666_p6, %p5010_p12  ;;  %p4674_p1 = scmp.lt.s32.totalorder %s4672_s15, %s4665_s13 }
  0xb4   : > { %p4669_p9 = pneg %p4668_p8  ;;  %p4675_p5 = por %p4674_p1, %p4673_p10 }
  0xb6   : > { %p4676_p11 = pnand %p4675_p5, %p4669_p9 }
  0xb8   : > { %4679 = shalt.err (!%p4676_p11)
}
  0xb9   : > { %4431 = dma.hbm_to_vmem [thread:$0]  (!%p5873_p0), %s5101_s20, 4096, %s5105_s18, %s5004_s21, %s4796_s25, %s4796_s25, %s4797_s26  }
  0xba   : > { %s3517_s22 = sshll.u32 %s4792_s30, 8  ;;  %s375_s8 = scalar_lea.vmem [#allocation8], %s3463_s12 }
  0xbb   : > { %s5137_s17 = scalar_lea.hbm %s5823_s3, %s3517_s22  ;;  %s382_s23 = sshll.u32 %s375_s8, 4  ;;  %s5141_s23 = int_to_ptr.vmem [resolvable:$true] %s382_s23 }
  0xbc   : > { %s5874_s13 = sand.u32 1, %s4792_s30   ;;  %s4680_s4 = scalar_lea.hbm %s5137_s17, 256 }
  0xbd   : > { %s5145_s1 = scalar_lea.sflag [#allocation9], %s5874_s13  ;;  %p4681_p4 = scmp.ne.s32.totalorder %s5137_s17, %s4680_s4 }
  0xbe   : > { %s4685_s10 = scalar_lea.hbm %s5823_s3, 512  ;;  %p4686_p7 = scmp.lt.u32.totalorder %s5137_s17, %s5823_s3 }
  0xbf   : > { %p4683_p13 = pnand %p4681_p4, %p5010_p12  ;;  %p4687_p2 = scmp.lt.u32.totalorder %s4685_s10, %s4680_s4 }
  0xc0   : > { %p4689_p8 = scmp.lt.u32.totalorder %s4680_s4, %s5137_s17 }
  0xc1   : > { %p4684_p3 = pneg %p4683_p13  ;;  %p4688_p6 = por %p4687_p2, %p4686_p7 }
  0xc3   : > { %p4690_p9 = por %p4689_p8, %p4688_p6 }
  0xc5   : > { %p4691_p10 = pnand %p4690_p9, %p4684_p3 }
  0xc7   : > { %4694 = shalt.err (!%p4691_p10)
}
  0xc8   : > { %s4695_s18 = scalar_lea.vmem %s5141_s23, 256  ;;  %s4802_s12 = smov [#allocation8]  }
  0xc9   : > { %p4696_p1 = scmp.ne.s32.totalorder %s5141_s23, %s4695_s18  ;;  %s4700_s15 = sshll.u32 %s4802_s12, 4  ;;  %s4701_s15 = int_to_ptr.vmem [resolvable:$false] %s4700_s15 }
  0xca   : > { %s4702_s22 = scalar_lea.vmem %s4701_s15, 512  ;;  %p4703_p4 = scmp.lt.s32.totalorder %s5141_s23, %s4701_s15 }
  0xcb   : > { %p4698_p5 = pnand %p4696_p1, %p5010_p12  ;;  %p4704_p13 = scmp.lt.s32.totalorder %s4702_s22, %s4695_s18 }
  0xcd   : > { %p4699_p11 = pneg %p4698_p5  ;;  %p4705_p7 = por %p4704_p13, %p4703_p4 }
  0xcf   : > { %p4706_p2 = pnand %p4705_p7, %p4699_p11 }
  0xd1   : > { %4709 = shalt.err (!%p4706_p2)
}
  0xd2   : > { %s4803_s24 = smov 32   ;;  %s4804_s14 = smov 2  }
  0xd3   : > { %4434 = dma.hbm_to_vmem [thread:$0]  (!%p5873_p0), %s5137_s17, 256, %s5141_s23, %s5145_s1, %s4803_s24, %s4803_s24, %s4804_s14  }
  0xd4   : > { %p5875_p12 = scmp.ne.s32.totalorder %s5860_s19, 0 }
  0xd5   : > { %s5172_s27 = sand.u32 (!%p5875_p12), 1, %s4784_s28   ;;  %p5876_p3 = scmp.ne.s32.totalorder (!%p5875_p12), %s5855_s16, 0 }
  0xd6   : > { %394 = sbr.rel (%p5875_p12) target bundleno = 1498 (0x5da), region = 52  ;;  %s3467_s8 = sshll.u32 (!%p5875_p12), %s5172_s27, 7 }
  0xd7   : > { %s397_s13 = scalar_lea.sflag (!%p5875_p12), [#allocation3], %s5172_s27  ;;  %s5176_s4 = scalar_lea.vmem (!%p5875_p12), [#allocation2], %s3467_s8 }
  0xdd   : > { %4755 = dma.done.wait (%p5876_p3), %s397_s13, 2048  }
  0xde   : > { %4757 = vsyncadd (%p5876_p3), %s397_s13, 4294965248  ;;  %s405_s11 = sand.u32 1, %s4876_s9   ;;  %s5183_s17 = scalar_lea.vmem [#allocation5], %s3467_s8 }
  0xdf   : > { %s406_s19 = scalar_lea.sflag [#allocation6], %s405_s11 }
  0xe0   : > { %4759 = dma.done.wait (%p5876_p3), %s406_s19, 6144  }
  0xe1   : > { %4761 = vsyncadd (%p5876_p3), %s406_s19, 4294961152  ;;  %s3469_s23 = sshll.u32 %s5172_s27, 8  ;;  %s3470_s1 = sshll.u32 %s5172_s27, 4 }
  0xe2   : > { %s5191_s25 = scalar_lea.vmem [#allocation7], %s3469_s23  ;;  %s424_s26 = scalar_lea.sflag [#allocation9], %s405_s11 }
  0xe3   : > { %s5193_s10 = scalar_lea.vmem [#allocation8], %s3470_s1 }
  0xe4   : > { %4763 = dma.done.wait (%p5876_p3), %s424_s26, 256  }
  0xe5   : > { %4765 = vsyncadd (%p5876_p3), %s424_s26, 4294967040  ;;  %p5877_p0 = scmp.eq.s32.totalorder %s4876_s9, 0 }
  0xe7   : > { %4767 = dma.done.wait (%p5877_p0), [#allocation9], 4096   ;;  %p5878_p6 = pmov %p5877_p0 }
  0xe8   : > { %p5879_p8 = pmov %p5877_p0 }
  0xe9   : > { %4769 = vsyncadd (%p5878_p6), [#allocation9], 4294963200 }
  0xea   : > { %4771 = dma.done.wait (%p5879_p8), [#allocation12], 8192   ;;  %p5880_p9 = pmov %p5877_p0 }
  0xeb   : > { %v565_v0 = vld [vmem:[#allocation10] sm:$0xff]  ;;  %v566_v1 = vld [vmem:[#allocation10 + $0x8] sm:$0xff]  ;;  %v567_v2 = vld [vmem:[#allocation10 + $0x10] sm:$0xff]  ;;  %vm943_vm0 = vcmask 130048   ;;  %vm4806_vm1 = vmmov 0   ;;  %vm1672_vm2 = vcmask 1041409  }
  0xec   : > { %4773 = vsyncadd (%p5880_p9), [#allocation12], 4294959104  ;;  %v4150_v3 = vpack.c.bf16 %v566_v1, %v565_v0  ;;  %v568_v4 = vld [vmem:[#allocation10 + $0x18] sm:$0xff]  ;;  %v569_v6 = vld [vmem:[#allocation10 + $0x20] sm:$0xff]  ;;  %vm1674_vm3 = vcmask 1042434   ;;  %vm1676_vm4 = vcmask 1043459  }
  0xed   : > { %v4154_v5 = vpack.c.bf16 %v568_v4, %v567_v2  ;;  %v570_v7 = vld [vmem:[#allocation10 + $0x28] sm:$0xff]  ;;  %v5208_v9 = vld [vmem:[%s5176_s4] sm:$0xff]  ;;  %v571_v10 = vld [vmem:[#allocation10 + $0x30] sm:$0xff]  ;;  %vm1678_vm5 = vcmask 1044484   ;;  %vm1680_vm6 = vcmask 1045509   ;;  %vm1682_vm7 = vcmask 1046534  }
  0xee   : > { %4151 = vmatprep.subr.bf16.mxu0 %v4150_v3  ;;  %v4158_v8 = vpack.c.bf16 %v570_v7, %v569_v6  ;;  %v572_v11 = vld [vmem:[#allocation10 + $0x38] sm:$0xff]  ;;  %3776 = vmatprep.mubr.f32.mxu0 %v5208_v9  ;;  %v573_v13 = vld [vmem:[#allocation10 + $0x40] sm:$0xff]  ;;  %v574_v14 = vld [vmem:[#allocation10 + $0x48] sm:$0xff]  ;;  %vm1684_vm8 = vcmask 1047559   ;;  %s3474_s12 = sshll.u32 %s5172_s27, 3  ;;  %s5881_s15 = sld [smem:[#allocation24_spill]] }
  0xef   : > { %4153 = vmatpush3.bf16.msra.mxu0 %v4150_v3  ;;  %v4162_v12 = vpack.c.bf16 %v572_v11, %v571_v10  ;;  %v581_v15 = vld [vmem:[#allocation11] sm:$0xff]  ;;  %v582_v16 = vld [vmem:[#allocation11 + $0x8] sm:$0xff]  ;;  %v583_v17 = vld [vmem:[#allocation11 + $0x10] sm:$0xff]  ;;  %v4166_v21 = vpack.c.bf16 %v574_v14, %v573_v13  ;;  %s3508_s22 = sshll.u32 %s4876_s9, 7  ;;  %s486_s24 = scalar_lea.vmem [#allocation14], %s3474_s12 }
  0xf0   : > { %4155 = vmatprep.subr.bf16.mxu0 %v4154_v5  ;;  %v584_v18 = vld [vmem:[#allocation11 + $0x18] sm:$0xff]  ;;  %v4182_v19 = vpack.c.bf16 %v582_v16, %v581_v15  ;;  %v585_v22 = vld [vmem:[#allocation11 + $0x20] sm:$0xff]  ;;  %v586_v23 = vld [vmem:[#allocation11 + $0x28] sm:$0xff]  ;;  %s3281_s14 = sshll.u32 %s486_s24, 4  ;;  %s3268_s9 = scalar_lea.sflag [#allocation4], %s5172_s27  ;;  %s5777_s14 = int_to_ptr.vmem [resolvable:$true] %s3281_s14 }
  0xf1   : > { %v4186_v20 = vpack.c.bf16 %v584_v18, %v583_v17  ;;  %v575_v24 = vld [vmem:[#allocation10 + $0x50] sm:$0xff]  ;;  %v576_v25 = vld [vmem:[#allocation10 + $0x58] sm:$0xff]  ;;  %v4190_v26 = vpack.c.bf16 %v586_v23, %v585_v22  ;;  %v507_v27 = vld [vmem:[%s5183_s17] sm:$0xff]  ;;  %s4710_s19 = scalar_lea.vmem %s5777_s14, 128 }
  0xf2   : > { %4183 = vmatprep.subr.bf16.mxu1 %v4182_v19  ;;  %v4170_v28 = vpack.c.bf16 %v576_v25, %v575_v24  ;;  %v587_v29 = vld [vmem:[#allocation11 + $0x30] sm:$0xff]  ;;  %v588_v30 = vld [vmem:[#allocation11 + $0x38] sm:$0xff]  ;;  %3832 = vmatprep.mubr.f32.mxu1 %v507_v27  ;;  %v577_v31 = vld [vmem:[#allocation10 + $0x60] sm:$0xff]  ;;  %p4711_p10 = scmp.ne.s32.totalorder %s5777_s14, %s4710_s19 }
  0xf3   : > { %4157 = vmatpush3.bf16.msra.mxu0 %v4154_v5  ;;  %4185 = vmatpush3.bf16.msra.mxu1 %v4182_v19  ;;  %v578_v32 = vld [vmem:[#allocation10 + $0x68] sm:$0xff]  ;;  %v4194_v33 = vpack.c.bf16 %v588_v30, %v587_v29  ;;  %v589_v35 = vld [vmem:[#allocation11 + $0x40] sm:$0xff]  ;;  %v579_v37 = vld [vmem:[#allocation10 + $0x70] sm:$0xff]  ;;  %v613_v19 = vlaneseq }
  0xf4   : > { %4159 = vmatprep.subr.bf16.mxu0 %v4158_v8  ;;  %4187 = vmatprep.subr.bf16.mxu1 %v4186_v20  ;;  %v4174_v34 = vpack.c.bf16 %v578_v32, %v577_v31  ;;  %v590_v36 = vld [vmem:[#allocation11 + $0x48] sm:$0xff]  ;;  %v580_v38 = vld [vmem:[#allocation10 + $0x78] sm:$0xff]  ;;  %v591_v41 = vld [vmem:[#allocation11 + $0x50] sm:$0xff]  ;;  %p5883_p1 = scmp.ne.s32.totalorder %s5881_s15, 0 }
  0xf5   : > { %v4198_v39 = vpack.c.bf16 %v590_v36, %v589_v35  ;;  %v4178_v40 = vpack.c.bf16 %v580_v38, %v579_v37  ;;  %v592_v42 = vld [vmem:[#allocation11 + $0x58] sm:$0xff]  ;;  %v593_v44 = vld [vmem:[#allocation11 + $0x60] sm:$0xff]  ;;  %v594_v45 = vld [vmem:[#allocation11 + $0x68] sm:$0xff] }
  0xf6   : > { %v4202_v43 = vpack.c.bf16 %v592_v42, %v591_v41  ;;  %v5213_v46 = vld [vmem:[%s5176_s4 + $0x8] sm:$0xff]  ;;  %v4206_v47 = vpack.c.bf16 %v594_v45, %v593_v44  ;;  %v5216_v48 = vld [vmem:[%s5176_s4 + $0x10] sm:$0xff]  ;;  %v596_v50 = vld [vmem:[#allocation11 + $0x78] sm:$0xff]  ;;  %p4712_p5 = pnand %p4711_p10, %p5883_p1 }
  0xf7   : > { %4161 = vmatpush3.bf16.msra.mxu0 %v4158_v8  ;;  %4189 = vmatpush3.bf16.msra.mxu1 %v4186_v20  ;;  %v595_v49 = vld [vmem:[#allocation11 + $0x70] sm:$0xff]  ;;  %v5221_v51 = vld [vmem:[%s5176_s4 + $0x18] sm:$0xff]  ;;  %v5224_v53 = vld [vmem:[%s5176_s4 + $0x20] sm:$0xff]  ;;  %v5291_v20 = vshrl.u32 %v613_v19, 7 }
  0xf8   : > { %4163 = vmatprep.subr.bf16.mxu0 %v4162_v12  ;;  %4191 = vmatprep.subr.bf16.mxu1 %v4190_v26  ;;  %v4210_v52 = vpack.c.bf16 %v596_v50, %v595_v49  ;;  %v5229_v54 = vld [vmem:[%s5176_s4 + $0x28] sm:$0xff]  ;;  %v5232_v55 = vld [vmem:[%s5176_s4 + $0x30] sm:$0xff]  ;;  %v5238_v57 = vld [vmem:[%s5176_s4 + $0x38] sm:$0xff]  ;;  %p4713_p11 = pneg %p4712_p5 }
  0xf9   : > { %v508_v56 = vld [vmem:[%s5183_s17 + $0x8] sm:$0xff]  ;;  %v509_v58 = vld [vmem:[%s5183_s17 + $0x10] sm:$0xff]  ;;  %v5242_v59 = vld [vmem:[%s5176_s4 + $0x40] sm:$0xff] }
  0xfa   : > { %v510_v60 = vld [vmem:[%s5183_s17 + $0x18] sm:$0xff]  ;;  %v5248_v61 = vld [vmem:[%s5176_s4 + $0x48] sm:$0xff]  ;;  %v511_v62 = vld [vmem:[%s5183_s17 + $0x20] sm:$0xff] }
  0xfb   : > { %4165 = vmatpush3.bf16.msra.mxu0 %v4162_v12  ;;  %4193 = vmatpush3.bf16.msra.mxu1 %v4190_v26  ;;  %v5252_v63 = vld [vmem:[%s5176_s4 + $0x50] sm:$0xff]  ;;  %v512_v0 = vld [vmem:[%s5183_s17 + $0x28] sm:$0xff]  ;;  %v5258_v1 = vld [vmem:[%s5176_s4 + $0x58] sm:$0xff] }
  0xfc   : > { %4167 = vmatprep.subr.bf16.mxu0 %v4166_v21  ;;  %4195 = vmatprep.subr.bf16.mxu1 %v4194_v33  ;;  %v513_v2 = vld [vmem:[%s5183_s17 + $0x30] sm:$0xff]  ;;  %v5262_v3 = vld [vmem:[%s5176_s4 + $0x60] sm:$0xff]  ;;  %v514_v4 = vld [vmem:[%s5183_s17 + $0x38] sm:$0xff] }
  0xfd   : > { %v5268_v5 = vld [vmem:[%s5176_s4 + $0x68] sm:$0xff]  ;;  %v515_v6 = vld [vmem:[%s5183_s17 + $0x40] sm:$0xff]  ;;  %v5272_v7 = vld [vmem:[%s5176_s4 + $0x70] sm:$0xff] }
  0xfe   : > { %v5277_v8 = vld [vmem:[%s5176_s4 + $0x78] sm:$0xff]  ;;  %v516_v10 = vld [vmem:[%s5183_s17 + $0x48] sm:$0xff]  ;;  %v517_v11 = vld [vmem:[%s5183_s17 + $0x50] sm:$0xff]  ;;  %s5882_s4 = sld [smem:[#allocation28_spill]] }
  0xff   : > { %4169 = vmatpush3.bf16.msra.mxu0 %v4166_v21  ;;  %4197 = vmatpush3.bf16.msra.mxu1 %v4194_v33  ;;  %v518_v12 = vld [vmem:[%s5183_s17 + $0x58] sm:$0xff]  ;;  %v519_v13 = vld [vmem:[%s5183_s17 + $0x60] sm:$0xff]  ;;  %v520_v14 = vld [vmem:[%s5183_s17 + $0x68] sm:$0xff]  ;;  %v5294_v21 = vsub.s32 0, %v5291_v20 }
 0x100   : > { %4171 = vmatprep.subr.bf16.mxu0 %v4170_v28  ;;  %4199 = vmatprep.subr.bf16.mxu1 %v4198_v39  ;;  %v521_v15 = vld [vmem:[%s5183_s17 + $0x70] sm:$0xff]  ;;  %v523_v16 = vld [vmem:[%s5191_s25] sm:$0xff]  ;;  %v522_v17 = vld [vmem:[%s5183_s17 + $0x78] sm:$0xff] }
 0x101   : > { %v527_v18 = vld [vmem:[%s5191_s25 + $0x20] sm:$0xff] }
 0x102   : > { %v5299_v22 = vld [vmem:[%s5827_s7] sm:$0x3] }
 0x103   : > { %4173 = vmatpush3.bf16.msra.mxu0 %v4170_v28  ;;  %4201 = vmatpush3.bf16.msra.mxu1 %v4198_v39  ;;  %v5303_v23 = vrot.slane %v5299_v22, %v5294_v21 }
 0x104   : > { %4175 = vmatprep.subr.bf16.mxu0 %v4174_v34  ;;  %4203 = vmatprep.subr.bf16.mxu1 %v4202_v43  ;;  %s5775_s11 = scalar_lea.hbm %s5882_s4, %s3508_s22 }
 0x107   : > { %4177 = vmatpush3.bf16.msra.mxu0 %v4174_v34  ;;  %4205 = vmatpush3.bf16.msra.mxu1 %v4202_v43  ;;  %v531_v43 = vld [vmem:[%s5191_s25 + $0x40] sm:$0xff] }
 0x108   : > { %4179 = vmatprep.subr.bf16.mxu0 %v4178_v40  ;;  %4207 = vmatprep.subr.bf16.mxu1 %v4206_v47 }
 0x10b   : > { %4181 = vmatpush3.bf16.msra.mxu0 %v4178_v40  ;;  %4209 = vmatpush3.bf16.msra.mxu1 %v4206_v47  ;;  %v524_v40 = vld [vmem:[%s5191_s25 + $0x8] sm:$0xff] }
 0x10c   : > { %4211 = vmatprep.subr.bf16.mxu1 %v4210_v52 }
 0x10e   : > { %3777 = vmatmul.mubr.f32.vlgmr.msra.gmra.mrb[0].mxu0 %v5213_v46 }
 0x10f   : > { %3779 = vmatprep.mubr.f32.mxu0 %v5216_v48  ;;  %4213 = vmatpush3.bf16.msra.mxu1 %v4210_v52 }
 0x112   : > { %3780 = vmatmul.mubr.f32.gmra.mrb[2].mxu0 %v5221_v51  ;;  %3833 = vmatmul.mubr.f32.vlgmr.msra.gmra.mrb[0].mxu1 %v508_v56 }
 0x113   : > { %3782 = vmatprep.mubr.f32.mxu0 %v5224_v53  ;;  %3835 = vmatprep.mubr.f32.mxu1 %v509_v58  ;;  %v528_v58 = vld [vmem:[%s5191_s25 + $0x28] sm:$0xff] }
 0x116   : > { %3783 = vmatmul.mubr.f32.gmra.mrb[4].mxu0 %v5229_v54  ;;  %3836 = vmatmul.mubr.f32.gmra.mrb[2].mxu1 %v510_v60 }
 0x117   : > { %3785 = vmatprep.mubr.f32.mxu0 %v5232_v55  ;;  %3838 = vmatprep.mubr.f32.mxu1 %v511_v62 }
 0x11a   : > { %3786 = vmatmul.mubr.f32.gmra.mrb[6].mxu0 %v5238_v57  ;;  %3839 = vmatmul.mubr.f32.gmra.mrb[4].mxu1 %v512_v0  ;;  %v535_v0 = vld [vmem:[%s5191_s25 + $0x60] sm:$0xff] }
 0x11b   : > { %3788 = vmatprep.mubr.f32.mxu0 %v5242_v59  ;;  %3841 = vmatprep.mubr.f32.mxu1 %v513_v2 }
 0x11e   : > { %3789 = vmatmul.mubr.f32.gmra.mrb[8].mxu0 %v5248_v61  ;;  %3842 = vmatmul.mubr.f32.gmra.mrb[6].mxu1 %v514_v4 }
 0x11f   : > { %3791 = vmatprep.mubr.f32.mxu0 %v5252_v63  ;;  %3844 = vmatprep.mubr.f32.mxu1 %v515_v6 }
 0x122   : > { %3792 = vmatmul.mubr.f32.gmra.mrb[10].mxu0 %v5258_v1  ;;  %3845 = vmatmul.mubr.f32.gmra.mrb[8].mxu1 %v516_v10 }
 0x123   : > { %3794 = vmatprep.mubr.f32.mxu0 %v5262_v3  ;;  %3847 = vmatprep.mubr.f32.mxu1 %v517_v11 }
 0x126   : > { %3795 = vmatmul.mubr.f32.gmra.mrb[12].mxu0 %v5268_v5  ;;  %3848 = vmatmul.mubr.f32.gmra.mrb[10].mxu1 %v518_v12 }
 0x127   : > { %3797 = vmatprep.mubr.f32.mxu0 %v5272_v7  ;;  %3850 = vmatprep.mubr.f32.mxu1 %v519_v13 }
 0x12a   : > { %3798 = vmatmul.mubr.f32.gmra.mrb[14].mxu0 %v5277_v8  ;;  %3851 = vmatmul.mubr.f32.gmra.mrb[12].mxu1 %v520_v14  ;;  %v532_v14 = vld [vmem:[%s5191_s25 + $0x48] sm:$0xff] }
 0x12b   : > { %3853 = vmatprep.mubr.f32.mxu1 %v521_v15  ;;  %3860 = vmatprep.mubr.msk.f32.mxu0 %vm943_vm0, %v523_v16 }
 0x12e   : > { %3854 = vmatmul.mubr.f32.gmra.mrb[14].mxu1 %v522_v17  ;;  %v539_v17 = vld [vmem:[%s5191_s25 + $0x80] sm:$0xff] }
 0x12f   : > { %3867 = vmatprep.mubr.msk.f32.mxu1 %vm943_vm0, %v527_v18 }
 0x1e1   : > { %v3778_v24 = vpop.f32.mrb[0].mxu0 }
 0x1e2   : > { %v689_v25 = vadd.f32 %v3778_v24, %v5303_v23  ;;  %v683_v26 = vpop.f32.mrb[1].mxu0 }
 0x1e3   : > { %v684_v27 = vadd.f32 %v683_v26, %v5303_v23 }
 0x1e4   : > { %v763_v28 = vmax.f32 %v689_v25, 0.0 }
 0x1e5   : > { %v762_v29 = vmax.f32 %v684_v27, 0.0  ;;  %v3781_v30 = vpop.f32.mrb[2].mxu0  ;;  %v5313_v45 = vpop.f32.mrb[0].mxu1 }
 0x1e6   : > { %v699_v31 = vadd.f32 %v3781_v30, %v5303_v23  ;;  %v693_v32 = vpop.f32.mrb[3].mxu0  ;;  %v5316_v50 = vpop.f32.mrb[1].mxu1 }
 0x1e7   : > { %v4214_v33 = vpack.c.bf16 %v763_v28, %v762_v29  ;;  %v694_v34 = vadd.f32 %v693_v32, %v5303_v23  ;;  %v536_v29 = vld [vmem:[%s5191_s25 + $0x68] sm:$0xff]  ;;  %v543_v32 = vld [vmem:[%s5191_s25 + $0xa0] sm:$0xff] }
 0x1e8   : > { %v765_v35 = vmax.f32 %v699_v31, 0.0 }
 0x1e9   : > { %v764_v36 = vmax.f32 %v694_v34, 0.0  ;;  %v3784_v37 = vpop.f32.mrb[4].mxu0  ;;  %4215 = vmatprep.subr.bf16.mxu0 %v4214_v33  ;;  %v5323_v4 = vpop.f32.mrb[2].mxu1 }
 0x1ea   : > { %v709_v38 = vadd.f32 %v3784_v37, %v5303_v23  ;;  %v703_v39 = vpop.f32.mrb[5].mxu0  ;;  %4217 = vmatpush3.bf16.msra.mxu0 %v4214_v33  ;;  %v5326_v11 = vpop.f32.mrb[3].mxu1 }
 0x1eb   : > { %v4218_v41 = vpack.c.bf16 %v765_v35, %v764_v36  ;;  %v704_v42 = vadd.f32 %v703_v39, %v5303_v23 }
 0x1ec   : > { %v767_v44 = vmax.f32 %v709_v38, 0.0 }
 0x1ed   : > { %v766_v47 = vmax.f32 %v704_v42, 0.0  ;;  %v3787_v49 = vpop.f32.mrb[6].mxu0  ;;  %3861 = vmatmul.mubr.msk.f32.vlgmr.msra.gmra.mrb[16].mxu0 %vm943_vm0, %v524_v40  ;;  %4219 = vmatprep.subr.bf16.mxu1 %v4218_v41  ;;  %v5333_v19 = vpop.f32.mrb[4].mxu1  ;;  %v540_v40 = vld [vmem:[%s5191_s25 + $0x88] sm:$0xff] }
 0x1ee   : > { %v719_v52 = vadd.f32 %v3787_v49, %v5303_v23  ;;  %v713_v56 = vpop.f32.mrb[7].mxu0  ;;  %4221 = vmatpush3.bf16.msra.mxu1 %v4218_v41  ;;  %3874 = vmatprep.mubr.msk.f32.mxu0 %vm943_vm0, %v531_v43  ;;  %v5336_v26 = vpop.f32.mrb[5].mxu1  ;;  %v547_v43 = vld [vmem:[%s5191_s25 + $0xc0] sm:$0xff] }
 0x1ef   : > { %v4222_v60 = vpack.c.bf16 %v767_v44, %v766_v47  ;;  %v714_v62 = vadd.f32 %v713_v56, %v5303_v23 }
 0x1f0   : > { %v769_v2 = vmax.f32 %v719_v52, 0.0 }
 0x1f1   : > { %v768_v6 = vmax.f32 %v714_v62, 0.0  ;;  %v3790_v10 = vpop.f32.mrb[8].mxu0  ;;  %3868 = vmatmul.mubr.msk.f32.vlgmr.msra.gmra.mrb[16].mxu1 %vm943_vm0, %v528_v58  ;;  %4223 = vmatprep.subr.bf16.mxu0 %v4222_v60  ;;  %v5343_v34 = vpop.f32.mrb[6].mxu1  ;;  %v544_v58 = vld [vmem:[%s5191_s25 + $0xa8] sm:$0xff] }
 0x1f2   : > { %v729_v12 = vadd.f32 %v3790_v10, %v5303_v23  ;;  %v723_v13 = vpop.f32.mrb[9].mxu0  ;;  %4225 = vmatpush3.bf16.msra.mxu0 %v4222_v60  ;;  %3881 = vmatprep.mubr.msk.f32.mxu1 %vm943_vm0, %v535_v0  ;;  %v5346_v37 = vpop.f32.mrb[7].mxu1  ;;  %v551_v0 = vld [vmem:[%s5191_s25 + $0xe0] sm:$0xff]  ;;  %v548_v10 = vld [vmem:[%s5191_s25 + $0xc8] sm:$0xff] }
 0x1f3   : > { %v4226_v15 = vpack.c.bf16 %v769_v2, %v768_v6  ;;  %v724_v16 = vadd.f32 %v723_v13, %v5303_v23  ;;  %v552_v13 = vld [vmem:[%s5191_s25 + $0xe8] sm:$0xff] }
 0x1f4   : > { %v771_v18 = vmax.f32 %v729_v12, 0.0 }
 0x1f5   : > { %v770_v24 = vmax.f32 %v724_v16, 0.0  ;;  %v3793_v25 = vpop.f32.mrb[10].mxu0  ;;  %3875 = vmatmul.mubr.msk.f32.vlgmr.msra.gmra.mrb[18].mxu0 %vm943_vm0, %v532_v14  ;;  %4227 = vmatprep.subr.bf16.mxu1 %v4226_v15 }
 0x1f6   : > { %v739_v27 = vadd.f32 %v3793_v25, %v5303_v23  ;;  %v733_v28 = vpop.f32.mrb[11].mxu0  ;;  %4229 = vmatpush3.bf16.msra.mxu1 %v4226_v15  ;;  %3888 = vmatprep.mubr.msk.f32.mxu0 %vm943_vm0, %v539_v17 }
 0x1f7   : > { %v4230_v30 = vpack.c.bf16 %v771_v18, %v770_v24  ;;  %v734_v31 = vadd.f32 %v733_v28, %v5303_v23  ;;  %v598_v28 = vld [vmem:[#allocation13 + $0x8] sm:$0xff] }
 0x1f8   : > { %v773_v33 = vmax.f32 %v739_v27, 0.0  ;;  %v597_v27 = vld [vmem:[#allocation13] sm:$0xff] }
 0x1f9   : > { %v772_v35 = vmax.f32 %v734_v31, 0.0  ;;  %v3796_v36 = vpop.f32.mrb[12].mxu0  ;;  %3882 = vmatmul.mubr.msk.f32.vlgmr.msra.gmra.mrb[18].mxu1 %vm943_vm0, %v536_v29  ;;  %4231 = vmatprep.subr.bf16.mxu0 %v4230_v30  ;;  %v1887_v29 = vld [vmem:[#allocation10 + $0x80] sm:$0xff] }
 0x1fa   : > { %v749_v38 = vadd.f32 %v3796_v36, %v5303_v23  ;;  %v743_v39 = vpop.f32.mrb[13].mxu0  ;;  %4233 = vmatpush3.bf16.msra.mxu0 %v4230_v30  ;;  %3895 = vmatprep.mubr.msk.f32.mxu1 %vm943_vm0, %v543_v32  ;;  %v4247_v30 = vpack.c.bf16 %v598_v28, %v597_v27  ;;  %v4805_v32 = vmov 0.0|0.0   ;;  %v1889_v36 = vld [vmem:[#allocation10 + $0x90] sm:$0xff] }
 0x1fb   : > { %v4234_v41 = vpack.c.bf16 %v773_v33, %v772_v35  ;;  %v744_v42 = vadd.f32 %v743_v39, %v5303_v23  ;;  %v599_v33 = vld [vmem:[#allocation13 + $0x10] sm:$0xff]  ;;  %v600_v35 = vld [vmem:[#allocation13 + $0x18] sm:$0xff] }
 0x1fc   : > { %v775_v44 = vmax.f32 %v749_v38, 0.0  ;;  %v1890_v38 = vld [vmem:[#allocation10 + $0x98] sm:$0xff]  ;;  %v4250_v39 = vpack.c.bf16 %v600_v35, %v599_v33  ;;  %v607_v28 = vld [vmem:[#allocation13 + $0x50] sm:$0xff]  ;;  %v609_v35 = vld [vmem:[#allocation13 + $0x60] sm:$0xff] }
 0x1fd   : > { %v774_v47 = vmax.f32 %v744_v42, 0.0  ;;  %v3799_v49 = vpop.f32.mrb[14].mxu0  ;;  %3889 = vmatmul.mubr.msk.f32.vlgmr.msra.gmra.mrb[20].mxu0 %vm943_vm0, %v540_v40  ;;  %4235 = vmatprep.subr.bf16.mxu1 %v4234_v41  ;;  %v4274_v40 = vpack.c.bf16 %v1890_v38, %v1889_v36  ;;  %v1892_v42 = vld [vmem:[#allocation10 + $0xa8] sm:$0xff]  ;;  %v1899_v38 = vld [vmem:[#allocation10 + $0xe0] sm:$0xff] }
 0x1fe   : > { %v759_v52 = vadd.f32 %v3799_v49, %v5303_v23  ;;  %v753_v56 = vpop.f32.mrb[15].mxu0  ;;  %4237 = vmatpush3.bf16.msra.mxu1 %v4234_v41  ;;  %3902 = vmatprep.mubr.msk.f32.mxu0 %vm943_vm0, %v547_v43  ;;  %v1891_v41 = vld [vmem:[#allocation10 + $0xa0] sm:$0xff]  ;;  %v610_v36 = vld [vmem:[#allocation13 + $0x68] sm:$0xff] }
 0x1ff   : > { %v4238_v60 = vpack.c.bf16 %v775_v44, %v774_v47  ;;  %v754_v62 = vadd.f32 %v753_v56, %v5303_v23  ;;  %v5366_v23 = vpop.f32.mrb[8].mxu1  ;;  %v601_v43 = vld [vmem:[#allocation13 + $0x20] sm:$0xff]  ;;  %v4278_v44 = vpack.c.bf16 %v1892_v42, %v1891_v41  ;;  %v602_v47 = vld [vmem:[#allocation13 + $0x28] sm:$0xff]  ;;  %v1894_v56 = vld [vmem:[#allocation10 + $0xb8] sm:$0xff] }
 0x200   : > { %v777_v2 = vmax.f32 %v759_v52, 0.0  ;;  %v5368_v14 = vpop.f32.mrb[9].mxu1  ;;  %v4253_v49 = vpack.c.bf16 %v602_v47, %v601_v43  ;;  %v1893_v52 = vld [vmem:[#allocation10 + $0xb0] sm:$0xff]  ;;  %v1902_v43 = vld [vmem:[#allocation10 + $0xf8] sm:$0xff] }
 0x201   : > { %v776_v6 = vmax.f32 %v754_v62, 0.0  ;;  %3896 = vmatmul.mubr.msk.f32.vlgmr.msra.gmra.mrb[20].mxu1 %vm943_vm0, %v544_v58  ;;  %4239 = vmatprep.subr.bf16.mxu0 %v4238_v60  ;;  %v5370_v15 = vpop.f32.mrb[10].mxu1  ;;  %v603_v58 = vld [vmem:[#allocation13 + $0x30] sm:$0xff]  ;;  %v604_v62 = vld [vmem:[#allocation13 + $0x38] sm:$0xff] }
 0x202   : > { %4241 = vmatpush3.bf16.msra.mxu0 %v4238_v60  ;;  %3909 = vmatprep.mubr.msk.f32.mxu1 %vm943_vm0, %v551_v0  ;;  %v5372_v16 = vpop.f32.mrb[11].mxu1  ;;  %v4282_v60 = vpack.c.bf16 %v1894_v56, %v1893_v52  ;;  %v4256_v0 = vpack.c.bf16 %v604_v62, %v603_v58  ;;  %v1901_v42 = vld [vmem:[#allocation10 + $0xf0] sm:$0xff]  ;;  %v4807_v56 = vmov 0.0   ;;  %v1904_v58 = vld [vmem:[#allocation11 + $0x80] sm:$0xff] }
 0x203   : > { %v4242_v12 = vpack.c.bf16 %v777_v2, %v776_v6  ;;  %v5374_v17 = vpop.f32.mrb[12].mxu1  ;;  %4246 = vmatprep.subr.bf16.mxu0 %v4805_v32  ;;  %v605_v2 = vld [vmem:[#allocation13 + $0x40] sm:$0xff]  ;;  %v606_v6 = vld [vmem:[#allocation13 + $0x48] sm:$0xff]  ;;  %v4298_v47 = vpack.c.bf16 %v1902_v43, %v1901_v42 }
 0x204   : > { %v5376_v18 = vpop.f32.mrb[13].mxu1 }
 0x205   : > { %3903 = vmatmul.mubr.msk.f32.vlgmr.msra.gmra.mrb[22].mxu0 %vm943_vm0, %v548_v10  ;;  %4243 = vmatprep.subr.bf16.mxu1 %v4242_v12  ;;  %v5378_v24 = vpop.f32.mrb[14].mxu1  ;;  %v1895_v10 = vld [vmem:[#allocation10 + $0xc0] sm:$0xff] }
 0x206   : > { %4245 = vmatpush3.bf16.msra.mxu1 %v4242_v12  ;;  %v5380_v25 = vpop.f32.mrb[15].mxu1  ;;  %4248 = vmatpush3.bf16.msra.mxu0 %v4247_v30  ;;  %v1896_v12 = vld [vmem:[#allocation10 + $0xc8] sm:$0xff]  ;;  %v1898_v30 = vld [vmem:[#allocation10 + $0xd8] sm:$0xff] }
 0x207   : > { %4249 = vmatprep.subr.bf16.mxu0 %v4805_v32  ;;  %v4286_v27 = vpack.c.bf16 %v1896_v12, %v1895_v10  ;;  %3944 = vmatprep.mubr.msk.f32.mxu0 %vm4806_vm1, %v4807_v56 }
 0x209   : > { %3910 = vmatmul.mubr.msk.f32.vlgmr.msra.gmra.mrb[22].mxu1 %vm943_vm0, %v552_v13  ;;  %v4259_v13 = vpack.c.bf16 %v606_v6, %v605_v2 }
 0x20a   : > { %3979 = vmatprep.mubr.f32.mxu1 %v5208_v9  ;;  %v1888_v9 = vld [vmem:[#allocation10 + $0x88] sm:$0xff]  ;;  %4251 = vmatpush3.bf16.msra.mxu0 %v4250_v39 }
 0x20b   : > { %v4270_v31 = vpack.c.bf16 %v1888_v9, %v1887_v29  ;;  %4252 = vmatprep.subr.bf16.mxu0 %v4805_v32  ;;  %v608_v29 = vld [vmem:[#allocation13 + $0x58] sm:$0xff]  ;;  %v1897_v9 = vld [vmem:[#allocation10 + $0xd0] sm:$0xff]  ;;  %v1900_v39 = vld [vmem:[#allocation10 + $0xe8] sm:$0xff] }
 0x20c   : > { %v4290_v33 = vpack.c.bf16 %v1898_v30, %v1897_v9  ;;  %v4294_v41 = vpack.c.bf16 %v1900_v39, %v1899_v38 }
 0x20d   : > { %4271 = vmatprep.subr.bf16.mxu1 %v4270_v31 }
 0x20e   : > { %4273 = vmatpush3.bf16.msra.mxu1 %v4270_v31  ;;  %4254 = vmatpush3.bf16.msra.mxu0 %v4253_v49  ;;  %v4262_v31 = vpack.c.bf16 %v608_v29, %v607_v28  ;;  %v612_v49 = vld [vmem:[#allocation13 + $0x78] sm:$0xff] }
 0x20f   : > { %4275 = vmatprep.subr.bf16.mxu1 %v4274_v40  ;;  %4255 = vmatprep.subr.bf16.mxu0 %v4805_v32 }
 0x212   : > { %4277 = vmatpush3.bf16.msra.mxu1 %v4274_v40  ;;  %4257 = vmatpush3.bf16.msra.mxu0 %v4256_v0  ;;  %v4265_v40 = vpack.c.bf16 %v610_v36, %v609_v35 }
 0x213   : > { %4279 = vmatprep.subr.bf16.mxu1 %v4278_v44  ;;  %4258 = vmatprep.subr.bf16.mxu0 %v4805_v32 }
 0x216   : > { %4281 = vmatpush3.bf16.msra.mxu1 %v4278_v44  ;;  %4260 = vmatpush3.bf16.msra.mxu0 %v4259_v13  ;;  %v611_v44 = vld [vmem:[#allocation13 + $0x70] sm:$0xff] }
 0x217   : > { %4283 = vmatprep.subr.bf16.mxu1 %v4282_v60  ;;  %4261 = vmatprep.subr.bf16.mxu0 %v4805_v32  ;;  %v4268_v52 = vpack.c.bf16 %v612_v49, %v611_v44 }
 0x21a   : > { %4285 = vmatpush3.bf16.msra.mxu1 %v4282_v60  ;;  %4263 = vmatpush3.bf16.msra.mxu0 %v4262_v31  ;;  %v1905_v60 = vld [vmem:[#allocation11 + $0x88] sm:$0xff] }
 0x21b   : > { %4287 = vmatprep.subr.bf16.mxu1 %v4286_v27  ;;  %4264 = vmatprep.subr.bf16.mxu0 %v4805_v32  ;;  %v5392_v62 = vpack.c.bf16 %v1905_v60, %v1904_v58 }
 0x21e   : > { %4289 = vmatpush3.bf16.msra.mxu1 %v4286_v27  ;;  %4266 = vmatpush3.bf16.msra.mxu0 %v4265_v40 }
 0x21f   : > { %4291 = vmatprep.subr.bf16.mxu1 %v4290_v33  ;;  %4267 = vmatprep.subr.bf16.mxu0 %v4805_v32 }
 0x222   : > { %4293 = vmatpush3.bf16.msra.mxu1 %v4290_v33  ;;  %4269 = vmatpush3.bf16.msra.mxu0 %v4268_v52 }
 0x223   : > { %4295 = vmatprep.subr.bf16.mxu1 %v4294_v41  ;;  %4303 = vmatprep.subr.bf16.mxu0 %v5392_v62 }
 0x226   : > { %4297 = vmatpush3.bf16.msra.mxu1 %v4294_v41 }
 0x227   : > { %4299 = vmatprep.subr.bf16.mxu1 %v4298_v47 }
 0x22a   : > { %4301 = vmatpush3.bf16.msra.mxu1 %v4298_v47 }
 0x22d   : > { %3980 = vmatmul.mubr.f32.vlgmr.msra.gmra.mrb[24].mxu1 %v5213_v46  ;;  %v780_v46 = vsub.s32 1, %v5291_v20 }
 0x22e   : > { %3982 = vmatprep.mubr.f32.mxu1 %v5216_v48 }
 0x22f   : > { %v5414_v48 = vrot.slane %v5299_v22, %v780_v46 }
 0x231   : > { %3983 = vmatmul.mubr.f32.gmra.mrb[26].mxu1 %v5221_v51  ;;  %v854_v51 = vadd.f32 %v5313_v45, %v5414_v48  ;;  %v869_v22 = vadd.f32 %v5336_v26, %v5414_v48  ;;  %v879_v12 = vadd.f32 %v5346_v37, %v5414_v48  ;;  %v894_v36 = vadd.f32 %v5366_v23, %v5414_v48 }
 0x232   : > { %3985 = vmatprep.mubr.f32.mxu1 %v5224_v53  ;;  %v849_v53 = vadd.f32 %v5316_v50, %v5414_v48  ;;  %v904_v52 = vadd.f32 %v5370_v15, %v5414_v48  ;;  %v909_v15 = vadd.f32 %v5376_v18, %v5414_v48  ;;  %v924_v18 = vadd.f32 %v5378_v24, %v5414_v48 }
 0x233   : > { %v931_v13 = vmax.f32 %v869_v22, 0.0  ;;  %v933_v35 = vmax.f32 %v879_v12, 0.0  ;;  %v936_v49 = vmax.f32 %v894_v36, 0.0 }
 0x235   : > { %3986 = vmatmul.mubr.f32.gmra.mrb[28].mxu1 %v5229_v54  ;;  %v928_v54 = vmax.f32 %v854_v51, 0.0 }
 0x236   : > { %3988 = vmatprep.mubr.f32.mxu1 %v5232_v55  ;;  %v864_v55 = vadd.f32 %v5323_v4, %v5414_v48 }
 0x239   : > { %3989 = vmatmul.mubr.f32.gmra.mrb[30].mxu1 %v5238_v57  ;;  %v927_v57 = vmax.f32 %v849_v53, 0.0 }
 0x23a   : > { %3991 = vmatprep.mubr.f32.mxu1 %v5242_v59  ;;  %v859_v59 = vadd.f32 %v5326_v11, %v5414_v48  ;;  %v884_v11 = vadd.f32 %v5343_v34, %v5414_v48  ;;  %v889_v34 = vadd.f32 %v5368_v14, %v5414_v48  ;;  %v899_v14 = vadd.f32 %v5372_v16, %v5414_v48 }
 0x23c   : > { %v934_v33 = vmax.f32 %v884_v11, 0.0  ;;  %v935_v60 = vmax.f32 %v889_v34, 0.0 }
 0x23d   : > { %3992 = vmatmul.mubr.f32.gmra.mrb[32].mxu1 %v5248_v61 }
 0x23e   : > { %3994 = vmatprep.mubr.f32.mxu1 %v5252_v63 }
 0x241   : > { %3995 = vmatmul.mubr.f32.gmra.mrb[34].mxu1 %v5258_v1 }
 0x242   : > { %3997 = vmatprep.mubr.f32.mxu1 %v5262_v3 }
 0x245   : > { %3998 = vmatmul.mubr.f32.gmra.mrb[36].mxu1 %v5268_v5  ;;  %v930_v5 = vmax.f32 %v864_v55, 0.0  ;;  %v914_v55 = vadd.f32 %v5374_v17, %v5414_v48 }
 0x246   : > { %4000 = vmatprep.mubr.f32.mxu1 %v5272_v7  ;;  %v874_v7 = vadd.f32 %v5333_v19, %v5414_v48 }
 0x248   : > { %v932_v10 = vmax.f32 %v874_v7, 0.0 }
 0x249   : > { %4001 = vmatmul.mubr.f32.gmra.mrb[38].mxu1 %v5277_v8  ;;  %v929_v8 = vmax.f32 %v859_v59, 0.0 }
 0x2c0   : > { %v3862_v61 = vpop.f32.mrb[16].mxu0 }
 0x2c1   : > { %v1593_v63 = vmul.f32 %v3862_v61, %v928_v54  ;;  %v1016_v1 = vpop.f32.mrb[17].mxu0 }
 0x2c2   : > { %v1592_v3 = vmul.f32 %v1016_v1, %v927_v57 }
 0x2c4   : > { %v1608_v45 = vadd.f32 %v1593_v63, %v1592_v3  ;;  %v3869_v50 = vpop.f32.mrb[16].mxu1 }
 0x2c5   : > { %v1595_v0 = vmul.f32 %v3869_v50, %v930_v5  ;;  %v1097_v4 = vpop.f32.mrb[17].mxu1  ;;  %v938_v5 = vmax.f32 %v904_v52, 0.0 }
 0x2c6   : > { %v1609_v2 = vrot.slane %v1608_v45, 4  ;;  %v1594_v6 = vmul.f32 %v1097_v4, %v929_v8  ;;  %v940_v4 = vmax.f32 %v914_v55, 0.0 }
 0x2c8   : > { %v1610_v27 = vadd.f32 %v1609_v2, %v1608_v45  ;;  %v1615_v19 = vadd.f32 %v1595_v0, %v1594_v6  ;;  %v3876_v28 = vpop.f32.mrb[18].mxu0  ;;  %v937_v0 = vmax.f32 %v899_v14, 0.0 }
 0x2c9   : > { %v1597_v29 = vmul.f32 %v3876_v28, %v932_v10  ;;  %v1178_v9 = vpop.f32.mrb[19].mxu0 }
 0x2ca   : > { %v1611_v26 = vrot.slane %v1610_v27, 2  ;;  %v1616_v30 = vrot.slane %v1615_v19, 4  ;;  %v1596_v31 = vmul.f32 %v1178_v9, %v931_v13  ;;  %v939_v13 = vmax.f32 %v909_v15, 0.0 }
 0x2cc   : > { %v1612_v38 = vadd.f32 %v1611_v26, %v1610_v27  ;;  %v1617_v39 = vadd.f32 %v1616_v30, %v1615_v19  ;;  %v1622_v37 = vadd.f32 %v1597_v29, %v1596_v31  ;;  %v3883_v40 = vpop.f32.mrb[18].mxu1  ;;  %v919_v19 = vadd.f32 %v5380_v25, %v5414_v48 }
 0x2cd   : > { %v1599_v41 = vmul.f32 %v3883_v40, %v934_v33  ;;  %v1259_v42 = vpop.f32.mrb[19].mxu1 }
 0x2ce   : > { %v1618_v43 = vrot.slane %v1617_v39, 2  ;;  %v1623_v44 = vrot.slane %v1622_v37, 4  ;;  %v1598_v47 = vmul.f32 %v1259_v42, %v933_v35  ;;  %v1613_v58 = vrot.slane %v1612_v38, 1 }
 0x2cf   : > { %v941_v24 = vmax.f32 %v919_v19, 0.0 }
 0x2d0   : > { %v1619_v51 = vadd.f32 %v1618_v43, %v1617_v39  ;;  %v1624_v23 = vadd.f32 %v1623_v44, %v1622_v37  ;;  %v1629_v53 = vadd.f32 %v1599_v41, %v1598_v47  ;;  %v3890_v54 = vpop.f32.mrb[20].mxu0  ;;  %v1614_v7 = vadd.f32 %v1613_v58, %v1612_v38 }
 0x2d1   : > { %v1601_v57 = vmul.f32 %v3890_v54, %v936_v49  ;;  %v1340_v59 = vpop.f32.mrb[21].mxu0  ;;  %v942_v39 = vmax.f32 %v924_v18, 0.0  ;;  %v1912_v18 = vld [vmem:[#allocation11 + $0xc0] sm:$0xff] }
 0x2d2   : > { %v1620_v61 = vrot.slane %v1619_v51, 1  ;;  %v1625_v63 = vrot.slane %v1624_v23, 2  ;;  %v1630_v1 = vrot.slane %v1629_v53, 4  ;;  %v1600_v3 = vmul.f32 %v1340_v59, %v935_v60 }
 0x2d4   : > { %v1621_v8 = vadd.f32 %v1620_v61, %v1619_v51  ;;  %v1626_v22 = vadd.f32 %v1625_v63, %v1624_v23  ;;  %v1631_v45 = vadd.f32 %v1630_v1, %v1629_v53  ;;  %v1636_v50 = vadd.f32 %v1601_v57, %v1600_v3  ;;  %v3897_v16 = vpop.f32.mrb[20].mxu1 }
 0x2d5   : > { %v1603_v17 = vmul.f32 %v3897_v16, %v938_v5  ;;  %v1421_v2 = vpop.f32.mrb[21].mxu1  ;;  %v1907_v16 = vld [vmem:[#allocation11 + $0x98] sm:$0xff] }
 0x2d6   : > { %v1673_v6 = vsel %vm1672_vm2, %v1621_v8, %v1614_v7  ;;  %v1627_v10 = vrot.slane %v1626_v22, 1  ;;  %v1632_v11 = vrot.slane %v1631_v45, 2  ;;  %v1637_v12 = vrot.slane %v1636_v50, 4 }
 0x2d7   : > { %v1602_v27 = vmul.f32 %v1421_v2, %v937_v0  ;;  %v1908_v2 = vld [vmem:[#allocation11 + $0xa0] sm:$0xff] }
 0x2d8   : > { %v1628_v28 = vadd.f32 %v1627_v10, %v1626_v22  ;;  %v1633_v29 = vadd.f32 %v1632_v11, %v1631_v45  ;;  %v1638_v9 = vadd.f32 %v1637_v12, %v1636_v50  ;;  %v3904_v26 = vpop.f32.mrb[22].mxu0  ;;  %v1906_v50 = vld [vmem:[#allocation11 + $0x90] sm:$0xff]  ;;  %v1911_v12 = vld [vmem:[#allocation11 + $0xb8] sm:$0xff] }
 0x2d9   : > { %v1643_v30 = vadd.f32 %v1603_v17, %v1602_v27  ;;  %v1605_v31 = vmul.f32 %v3904_v26, %v940_v4  ;;  %v1502_v33 = vpop.f32.mrb[23].mxu0  ;;  %v4306_v4 = vpack.c.bf16 %v1907_v16, %v1906_v50  ;;  %v1910_v11 = vld [vmem:[#allocation11 + $0xb0] sm:$0xff]  ;;  %v1913_v27 = vld [vmem:[#allocation11 + $0xc8] sm:$0xff] }
 0x2da   : > { %v1675_v35 = vsel %vm1674_vm3, %v1628_v28, %v1673_v6  ;;  %v1634_v36 = vrot.slane %v1633_v29, 1  ;;  %v1639_v34 = vrot.slane %v1638_v9, 2  ;;  %v1604_v38 = vmul.f32 %v1502_v33, %v939_v13  ;;  %v1909_v6 = vld [vmem:[#allocation11 + $0xa8] sm:$0xff]  ;;  %v5459_v28 = vld [vmem:[%s5827_s7 + $0x2] sm:$0x3] }
 0x2db   : > { %v1644_v37 = vrot.slane %v1643_v30, 4  ;;  %v4310_v10 = vpack.c.bf16 %v1909_v6, %v1908_v2  ;;  %v4314_v13 = vpack.c.bf16 %v1911_v12, %v1910_v11  ;;  %v4318_v19 = vpack.c.bf16 %v1913_v27, %v1912_v18  ;;  %v534_v6 = vld [vmem:[%s5191_s25 + $0x58] sm:$0xff]  ;;  %v537_v27 = vld [vmem:[%s5191_s25 + $0x70] sm:$0xff] }
 0x2dc   : > { %v1635_v40 = vadd.f32 %v1634_v36, %v1633_v29  ;;  %v1640_v41 = vadd.f32 %v1639_v34, %v1638_v9  ;;  %v1650_v42 = vadd.f32 %v1605_v31, %v1604_v38  ;;  %v3911_v25 = vpop.f32.mrb[22].mxu1  ;;  %v1915_v29 = vld [vmem:[#allocation11 + $0xd8] sm:$0xff]  ;;  %v5463_v26 = vrot.slane %v5459_v28, %v5294_v21  ;;  %v1917_v31 = vld [vmem:[#allocation11 + $0xe8] sm:$0xff] }
 0x2dd   : > { %v1645_v48 = vadd.f32 %v1644_v37, %v1643_v30  ;;  %v1607_v43 = vmul.f32 %v3911_v25, %v942_v39  ;;  %v1583_v44 = vpop.f32.mrb[23].mxu1  ;;  %v1916_v30 = vld [vmem:[#allocation11 + $0xe0] sm:$0xff]  ;;  %v1918_v37 = vld [vmem:[#allocation11 + $0xf0] sm:$0xff] }
 0x2de   : > { %v1641_v47 = vrot.slane %v1640_v41, 1  ;;  %v1651_v49 = vrot.slane %v1650_v42, 4  ;;  %v1606_v52 = vmul.f32 %v1583_v44, %v941_v24  ;;  %v1677_v58 = vsel %vm1676_vm4, %v1635_v40, %v1675_v35  ;;  %v1919_v24 = vld [vmem:[#allocation11 + $0xf8] sm:$0xff] }
 0x2df   : > { %v1646_v60 = vrot.slane %v1645_v48, 2  ;;  %v4326_v35 = vpack.c.bf16 %v1917_v31, %v1916_v30 }
 0x2e0   : > { %v1642_v51 = vadd.f32 %v1641_v47, %v1640_v41  ;;  %v1652_v23 = vadd.f32 %v1651_v49, %v1650_v42  ;;  %v1657_v53 = vadd.f32 %v1607_v43, %v1606_v52  ;;  %v4330_v42 = vpack.c.bf16 %v1919_v24, %v1918_v37 }
 0x2e1   : > { %v1647_v54 = vadd.f32 %v1646_v60, %v1645_v48 }
 0x2e2   : > { %v1653_v14 = vrot.slane %v1652_v23, 2  ;;  %v1658_v55 = vrot.slane %v1657_v53, 4  ;;  %v1679_v57 = vsel %vm1678_vm5, %v1642_v51, %v1677_v58 }
 0x2e3   : > { %v1648_v59 = vrot.slane %v1647_v54, 1 }
 0x2e4   : > { %v1654_v61 = vadd.f32 %v1653_v14, %v1652_v23  ;;  %v1659_v63 = vadd.f32 %v1658_v55, %v1657_v53 }
 0x2e5   : > { %v1649_v1 = vadd.f32 %v1648_v59, %v1647_v54  ;;  %v525_v54 = vld [vmem:[%s5191_s25 + $0x10] sm:$0xff] }
 0x2e6   : > { %v1655_v3 = vrot.slane %v1654_v61, 1  ;;  %v1660_v5 = vrot.slane %v1659_v63, 2  ;;  %4063 = vmatprep.mubr.msk.f32.mxu1 %vm943_vm0, %v525_v54 }
 0x2e7   : > { %v1681_v15 = vsel %vm1680_vm6, %v1649_v1, %v1679_v57  ;;  %v526_v57 = vld [vmem:[%s5191_s25 + $0x18] sm:$0xff] }
 0x2e8   : > { %v1656_v7 = vadd.f32 %v1655_v3, %v1654_v61  ;;  %v1661_v8 = vadd.f32 %v1660_v5, %v1659_v63  ;;  %v529_v5 = vld [vmem:[%s5191_s25 + $0x30] sm:$0xff] }
 0x2ea   : > { %v1662_v22 = vrot.slane %v1661_v8, 1  ;;  %v1683_v45 = vsel %vm1682_vm7, %v1656_v7, %v1681_v15 }
 0x2ec   : > { %v1663_v0 = vadd.f32 %v1662_v22, %v1661_v8  ;;  %v530_v8 = vld [vmem:[%s5191_s25 + $0x38] sm:$0xff] }
 0x2ee   : > { %v1685_v17 = vsel %vm1684_vm8, %v1663_v0, %v1683_v45 }
 0x2ef   : > { %3945 = vmatmul.mubr.f32.vlgmr.msra.gmra.mrb[24].mxu0 %v1685_v17 }
 0x2f0   : > { %4305 = vmatpush3.bf16.msra.mxu0 %v5392_v62  ;;  %v1914_v62 = vld [vmem:[#allocation11 + $0xd0] sm:$0xff] }
 0x2f1   : > { %4307 = vmatprep.subr.bf16.mxu0 %v4306_v4  ;;  %v4322_v9 = vpack.c.bf16 %v1915_v29, %v1914_v62  ;;  %v538_v29 = vld [vmem:[%s5191_s25 + $0x78] sm:$0xff] }
 0x2f4   : > { %4309 = vmatpush3.bf16.msra.mxu0 %v4306_v4  ;;  %v533_v4 = vld [vmem:[%s5191_s25 + $0x50] sm:$0xff] }
 0x2f5   : > { %4311 = vmatprep.subr.bf16.mxu0 %v4310_v10 }
 0x2f8   : > { %4313 = vmatpush3.bf16.msra.mxu0 %v4310_v10 }
 0x2f9   : > { %4315 = vmatprep.subr.bf16.mxu0 %v4314_v13 }
 0x2fc   : > { %4317 = vmatpush3.bf16.msra.mxu0 %v4314_v13 }
 0x2fd   : > { %4319 = vmatprep.subr.bf16.mxu0 %v4318_v19 }
 0x300   : > { %4321 = vmatpush3.bf16.msra.mxu0 %v4318_v19  ;;  %v3981_v33 = vpop.f32.mrb[24].mxu1 }
 0x301   : > { %4323 = vmatprep.subr.bf16.mxu0 %v4322_v9  ;;  %v2013_v36 = vadd.f32 %v3981_v33, %v5463_v26  ;;  %v2007_v34 = vpop.f32.mrb[25].mxu1 }
 0x302   : > { %v2008_v38 = vadd.f32 %v2007_v34, %v5463_v26 }
 0x303   : > { %v2087_v39 = vmax.f32 %v2013_v36, 0.0  ;;  %v541_v36 = vld [vmem:[%s5191_s25 + $0x90] sm:$0xff] }
 0x304   : > { %4325 = vmatpush3.bf16.msra.mxu0 %v4322_v9  ;;  %v2086_v40 = vmax.f32 %v2008_v38, 0.0  ;;  %v3984_v41 = vpop.f32.mrb[26].mxu1 }
 0x305   : > { %4327 = vmatprep.subr.bf16.mxu0 %v4326_v35  ;;  %v2023_v25 = vadd.f32 %v3984_v41, %v5463_v26  ;;  %v2017_v48 = vpop.f32.mrb[27].mxu1 }
 0x306   : > { %v4334_v43 = vpack.c.bf16 %v2087_v39, %v2086_v40  ;;  %v2018_v44 = vadd.f32 %v2017_v48, %v5463_v26  ;;  %v542_v39 = vld [vmem:[%s5191_s25 + $0x98] sm:$0xff] }
 0x307   : > { %v2089_v47 = vmax.f32 %v2023_v25, 0.0  ;;  %v545_v25 = vld [vmem:[%s5191_s25 + $0xb0] sm:$0xff] }
 0x308   : > { %4329 = vmatpush3.bf16.msra.mxu0 %v4326_v35  ;;  %4335 = vmatprep.subr.bf16.mxu1 %v4334_v43  ;;  %v2088_v49 = vmax.f32 %v2018_v44, 0.0  ;;  %v3987_v52 = vpop.f32.mrb[28].mxu1 }
 0x309   : > { %4331 = vmatprep.subr.bf16.mxu0 %v4330_v42  ;;  %4337 = vmatpush3.bf16.msra.mxu1 %v4334_v43  ;;  %v2033_v58 = vadd.f32 %v3987_v52, %v5463_v26  ;;  %v2027_v60 = vpop.f32.mrb[29].mxu1  ;;  %v546_v43 = vld [vmem:[%s5191_s25 + $0xb8] sm:$0xff] }
 0x30a   : > { %v4338_v51 = vpack.c.bf16 %v2089_v47, %v2088_v49  ;;  %v2028_v23 = vadd.f32 %v2027_v60, %v5463_v26  ;;  %v549_v47 = vld [vmem:[%s5191_s25 + $0xd0] sm:$0xff]  ;;  %v554_v52 = vld [vmem:[%s5191_s25 + $0xf8] sm:$0xff] }
 0x30b   : > { %v2091_v53 = vmax.f32 %v2033_v58, 0.0  ;;  %v553_v49 = vld [vmem:[%s5191_s25 + $0xf0] sm:$0xff] }
 0x30c   : > { %4333 = vmatpush3.bf16.msra.mxu0 %v4330_v42  ;;  %v2090_v14 = vmax.f32 %v2028_v23, 0.0  ;;  %v3990_v55 = vpop.f32.mrb[30].mxu1  ;;  %4339 = vmatprep.subr.bf16.mxu1 %v4338_v51  ;;  %v5515_v58 = vld [vmem:[%s5193_s10 + $0x2] sm:$0x3]  ;;  %v5518_v60 = vld [vmem:[%s5193_s10 + $0x4] sm:$0x3] }
 0x30d   : > { %4366 = vmatprep.subr.bf16.mxu0 %v4805_v32  ;;  %v2043_v59 = vadd.f32 %v3990_v55, %v5463_v26  ;;  %4064 = vmatmul.mubr.msk.f32.vlgmr.msra.gmra.mrb[40].mxu1 %vm943_vm0, %v526_v57  ;;  %v2037_v61 = vpop.f32.mrb[31].mxu1  ;;  %v5522_v23 = vld [vmem:[%s5193_s10] sm:$0x3]  ;;  %v1697_v54 = vrot.slane %v5518_v60, 6  ;;  %v5531_v55 = vld [vmem:[%s5193_s10 + $0x8] sm:$0x3] }
 0x30e   : > { %v4342_v63 = vpack.c.bf16 %v2091_v53, %v2090_v14  ;;  %v2038_v1 = vadd.f32 %v2037_v61, %v5463_v26  ;;  %4341 = vmatpush3.bf16.msra.mxu1 %v4338_v51  ;;  %4070 = vmatprep.mubr.msk.f32.mxu1 %vm943_vm0, %v529_v5  ;;  %v1695_v51 = vrot.slane %v5515_v58, 7  ;;  %v5525_v53 = vld [vmem:[%s5193_s10 + $0x6] sm:$0x3]  ;;  %v5536_v61 = vld [vmem:[%s5193_s10 + $0xa] sm:$0x3] }
 0x30f   : > { %v2093_v3 = vmax.f32 %v2043_v59, 0.0  ;;  %v1699_v57 = vrot.slane %v5525_v53, 5  ;;  %v1703_v5 = vrot.slane %v5536_v61, 3 }
 0x310   : > { %v2092_v15 = vmax.f32 %v2038_v1, 0.0  ;;  %v3993_v7 = vpop.f32.mrb[32].mxu1  ;;  %4343 = vmatprep.subr.bf16.mxu1 %v4342_v63  ;;  %v1696_v14 = vsel %vm1672_vm2, %v1695_v51, %v5522_v23 }
 0x311   : > { %v2053_v22 = vadd.f32 %v3993_v7, %v5463_v26  ;;  %4071 = vmatmul.mubr.msk.f32.vlgmr.msra.gmra.mrb[42].mxu1 %vm943_vm0, %v530_v8  ;;  %v2047_v45 = vpop.f32.mrb[33].mxu1  ;;  %v1698_v59 = vsel %vm1674_vm3, %v1697_v54, %v1696_v14  ;;  %v5546_v7 = vld [vmem:[%s5193_s10 + $0xe] sm:$0x3] }
 0x312   : > { %v4346_v50 = vpack.c.bf16 %v2093_v3, %v2092_v15  ;;  %v2048_v16 = vadd.f32 %v2047_v45, %v5463_v26  ;;  %4345 = vmatpush3.bf16.msra.mxu1 %v4342_v63  ;;  %4077 = vmatprep.mubr.msk.f32.mxu1 %vm943_vm0, %v533_v4  ;;  %v1701_v63 = vrot.slane %v5531_v55, 4  ;;  %v1700_v1 = vsel %vm1676_vm4, %v1699_v57, %v1698_v59  ;;  %v5541_v3 = vld [vmem:[%s5193_s10 + $0xc] sm:$0x3]  ;;  %v4498_v57 = vld [vmem:[%s5183_s17 + $0x40] sm:$0xff] }
 0x313   : > { %v2095_v0 = vmax.f32 %v2053_v22, 0.0  ;;  %v1705_v8 = vrot.slane %v5541_v3, 2  ;;  %v4808_v22 = vmov 1966171168   ;;  %v4497_v54 = vld [vmem:[%s5183_s17 + $0x38] sm:$0xff] }
 0x314   : > { %v2094_v17 = vmax.f32 %v2048_v16, 0.0  ;;  %v3996_v2 = vpop.f32.mrb[34].mxu1  ;;  %4347 = vmatprep.subr.bf16.mxu1 %v4346_v50  ;;  %v1702_v15 = vsel %vm1678_vm5, %v1701_v63, %v1700_v1  ;;  %v1783_v45 = vunpack.c.l.s4 %v4808_v22  ;;  %v1707_v16 = vrot.slane %v5546_v7, 1 }
 0x315   : > { %v2063_v10 = vadd.f32 %v3996_v2, %v5463_v26  ;;  %4078 = vmatmul.mubr.msk.f32.vlgmr.msra.gmra.mrb[44].mxu1 %vm943_vm0, %v534_v6  ;;  %v2057_v11 = vpop.f32.mrb[35].mxu1 }
 0x316   : > { %v4350_v12 = vpack.c.bf16 %v2095_v0, %v2094_v17  ;;  %v2058_v13 = vadd.f32 %v2057_v11, %v5463_v26  ;;  %4349 = vmatpush3.bf16.msra.mxu1 %v4346_v50  ;;  %4084 = vmatprep.mubr.msk.f32.mxu1 %vm943_vm0, %v537_v27  ;;  %v1704_v50 = vsel %vm1680_vm6, %v1703_v5, %v1702_v15  ;;  %v1784_v4 = vunpack.c.0.s8 %v1783_v45  ;;  %v4499_v5 = vld [vmem:[%s5183_s17 + $0x48] sm:$0xff] }
 0x317   : > { %v2097_v18 = vmax.f32 %v2063_v10, 0.0  ;;  %v1706_v0 = vsel %vm1682_vm7, %v1705_v8, %v1704_v50  ;;  %v4500_v8 = vld [vmem:[%s5183_s17 + $0x50] sm:$0xff] }
 0x318   : > { %v2096_v19 = vmax.f32 %v2058_v13, 0.0  ;;  %v3999_v62 = vpop.f32.mrb[36].mxu1  ;;  %4351 = vmatprep.subr.bf16.mxu1 %v4350_v12  ;;  %v1708_v17 = vsel %vm1684_vm8, %v1707_v16, %v1706_v0  ;;  %v5554_v2 = vsub.s32 %v1784_v4, %v5291_v20  ;;  %v4501_v16 = vld [vmem:[%s5183_s17 + $0x58] sm:$0xff]  ;;  %v4502_v4 = vld [vmem:[%s5183_s17 + $0x60] sm:$0xff] }
 0x319   : > { %v2073_v9 = vadd.f32 %v3999_v62, %v5463_v26  ;;  %4085 = vmatmul.mubr.msk.f32.vlgmr.msra.gmra.mrb[46].mxu1 %vm943_vm0, %v538_v29  ;;  %v2067_v30 = vpop.f32.mrb[37].mxu1 }
 0x31a   : > { %v4354_v31 = vpack.c.bf16 %v2097_v18, %v2096_v19  ;;  %v2068_v33 = vadd.f32 %v2067_v30, %v5463_v26  ;;  %4353 = vmatpush3.bf16.msra.mxu1 %v4350_v12  ;;  %4091 = vmatprep.mubr.msk.f32.mxu1 %vm943_vm0, %v541_v36  ;;  %v4490_v30 = vld [vmem:[%s5183_s17] sm:$0xff]  ;;  %v4492_v36 = vld [vmem:[%s5183_s17 + $0x10] sm:$0xff] }
 0x31b   : > { %v2099_v35 = vmax.f32 %v2073_v9, 0.0 }
 0x31c   : > { %v2098_v34 = vmax.f32 %v2068_v33, 0.0  ;;  %v4002_v38 = vpop.f32.mrb[38].mxu1  ;;  %4355 = vmatprep.subr.bf16.mxu1 %v4354_v31  ;;  %v4491_v33 = vld [vmem:[%s5183_s17 + $0x8] sm:$0xff] }
 0x31d   : > { %v2083_v37 = vadd.f32 %v4002_v38, %v5463_v26  ;;  %4092 = vmatmul.mubr.msk.f32.vlgmr.msra.gmra.mrb[48].mxu1 %vm943_vm0, %v542_v39  ;;  %v2077_v24 = vpop.f32.mrb[39].mxu1 }
 0x31e   : > { %v4358_v40 = vpack.c.bf16 %v2099_v35, %v2098_v34  ;;  %v2078_v41 = vadd.f32 %v2077_v24, %v5463_v26  ;;  %4357 = vmatpush3.bf16.msra.mxu1 %v4354_v31  ;;  %4098 = vmatprep.mubr.msk.f32.mxu1 %vm943_vm0, %v545_v25  ;;  %v550_v26 = vld [vmem:[%s5191_s25 + $0xd8] sm:$0xff]  ;;  %v4494_v25 = vld [vmem:[%s5183_s17 + $0x20] sm:$0xff] }
 0x31f   : > { %v2101_v42 = vmax.f32 %v2083_v37, 0.0  ;;  %v4493_v24 = vld [vmem:[%s5183_s17 + $0x18] sm:$0xff] }
 0x320   : > { %v2100_v48 = vmax.f32 %v2078_v41, 0.0  ;;  %4359 = vmatprep.subr.bf16.mxu1 %v4358_v40 }
 0x321   : > { %4099 = vmatmul.mubr.msk.f32.vlgmr.msra.gmra.mrb[50].mxu1 %vm943_vm0, %v546_v43 }
 0x322   : > { %v4362_v44 = vpack.c.bf16 %v2101_v42, %v2100_v48  ;;  %4361 = vmatpush3.bf16.msra.mxu1 %v4358_v40  ;;  %4105 = vmatprep.mubr.msk.f32.mxu1 %vm943_vm0, %v549_v47 }
 0x324   : > { %4363 = vmatprep.subr.bf16.mxu1 %v4362_v44 }
 0x325   : > { %4106 = vmatmul.mubr.msk.f32.vlgmr.msra.gmra.mrb[52].mxu1 %vm943_vm0, %v550_v26  ;;  %v4496_v26 = vld [vmem:[%s5183_s17 + $0x30] sm:$0xff] }
 0x326   : > { %4365 = vmatpush3.bf16.msra.mxu1 %v4362_v44  ;;  %4112 = vmatprep.mubr.msk.f32.mxu1 %vm943_vm0, %v553_v49  ;;  %v4495_v44 = vld [vmem:[%s5183_s17 + $0x28] sm:$0xff] }
 0x329   : > { %4113 = vmatmul.mubr.msk.f32.vlgmr.msra.gmra.mrb[54].mxu1 %vm943_vm0, %v554_v52 }
 0x3c2   : > { %v1776_v6 = vpop.f32.mrb[24].mxu0 }
 0x3c3   : > { %v1777_v10 = vadd.f32 %v1776_v6, %v1708_v17  ;;  %v3946_v11 = vpop.f32.mrb[25].mxu0 }
 0x3c5   : > { %v1788_v12 = vrot.slane %v1777_v10, %v5554_v2  ;;  %v1781_v19 = vcombine.high %v1777_v10, %v1777_v10  ;;  %v4503_v10 = vld [vmem:[%s5183_s17 + $0x68] sm:$0xff] }
 0x3c7   : > { %v1796_v13 = vcombine.high %v1788_v12, %v1788_v12  ;;  %v1804_v18 = vrot.slane %v1788_v12, %v5554_v2  ;;  %v1795_v38 = vrot.slane %v1781_v19, %v5554_v2  ;;  %v4504_v12 = vld [vmem:[%s5183_s17 + $0x70] sm:$0xff] }
 0x3c9   : > { %v1818_v27 = vrot.slane %v1796_v13, %v5554_v2  ;;  %v1826_v62 = vcombine.high %v1804_v18, %v1804_v18  ;;  %v1833_v29 = vrot.slane %v1804_v18, %v5294_v21  ;;  %v1797_v41 = vcombine.high %v1795_v38, %v1795_v38  ;;  %v4505_v18 = vld [vmem:[%s5183_s17 + $0x78] sm:$0xff]  ;;  %s4809_s17 = smov [#allocation14]  }
 0x3ca   : > { %v1811_v42 = vrot.slane %v1795_v38, %v5554_v2  ;;  %s4714_s23 = sshll.u32 %s4809_s17, 4  ;;  %s4715_s23 = int_to_ptr.vmem [resolvable:$false] %s4714_s23 }
 0x3cb   : > { %v1837_v9 = vrot.slane %v1818_v27, %v5294_v21  ;;  %v5562_v31 = vadd.f32 %v4490_v30, %v1833_v29  ;;  %v5565_v35 = vadd.f32 %v4491_v33, %v1833_v29  ;;  %v1841_v39 = vrot.slane %v1826_v62, %v5294_v21  ;;  %s4716_s1 = scalar_lea.vmem %s4715_s23, 256  ;;  %p4717_p4 = scmp.lt.s32.totalorder %s5777_s14, %s4715_s23 }
 0x3cc   : > { %v1828_v37 = vcombine.high %v1818_v27, %v1818_v27  ;;  %v1849_v52 = vrot.slane %v1811_v42, %v5294_v21  ;;  %v1825_v51 = vrot.slane %v1797_v41, %v5554_v2  ;;  %v1827_v1 = vcombine.high %v1811_v42, %v1811_v42  ;;  %v1923_v42 = vld [vmem:[#allocation13 + $0x90] sm:$0xff]  ;;  %p4718_p13 = scmp.lt.s32.totalorder %s4716_s1, %s4710_s19 }
 0x3cd   : > { %v5568_v34 = vadd.f32 %v4492_v36, %v1837_v9  ;;  %4035 = vmatprep.mubr.f32.mxu0 %v5562_v31  ;;  %v5576_v40 = vadd.f32 %v4493_v24, %v1837_v9  ;;  %v5580_v48 = vadd.f32 %v4494_v25, %v1841_v39  ;;  %v5586_v47 = vadd.f32 %v4495_v44, %v1841_v39  ;;  %v1921_v39 = vld [vmem:[#allocation13 + $0x80] sm:$0xff]  ;;  %v1924_v25 = vld [vmem:[#allocation13 + $0x98] sm:$0xff] }
 0x3ce   : > { %4036 = vmatmul.mubr.f32.vlgmr.msra.gmra.mrb[26].mxu0 %v5565_v35  ;;  %v1845_v43 = vrot.slane %v1828_v37, %v5294_v21  ;;  %v5599_v59 = vadd.f32 %v4498_v57, %v1849_v52  ;;  %v1853_v63 = vrot.slane %v1825_v51, %v5294_v21  ;;  %v5605_v15 = vadd.f32 %v4499_v5, %v1849_v52  ;;  %v1922_v37 = vld [vmem:[#allocation13 + $0x88] sm:$0xff]  ;;  %v1925_v52 = vld [vmem:[#allocation13 + $0xa0] sm:$0xff]  ;;  %v1928_v5 = vld [vmem:[#allocation13 + $0xb8] sm:$0xff]  ;;  %p4719_p7 = por %p4718_p13, %p4717_p4 }
 0x3cf   : > { %4038 = vmatprep.mubr.f32.mxu0 %v5568_v34  ;;  %v1857_v45 = vrot.slane %v1827_v1, %v5294_v21  ;;  %v1829_v50 = vcombine.high %v1825_v51, %v1825_v51  ;;  %v4367_v24 = vpack.c.bf16 %v1922_v37, %v1921_v39  ;;  %v1926_v51 = vld [vmem:[#allocation13 + $0xa8] sm:$0xff]  ;;  %v1927_v1 = vld [vmem:[#allocation13 + $0xb0] sm:$0xff]  ;;  %v1933_v39 = vld [vmem:[#allocation13 + $0xe0] sm:$0xff] }
 0x3d0   : > { %v5589_v49 = vadd.f32 %v4496_v26, %v1845_v43  ;;  %v5596_v14 = vadd.f32 %v4497_v54, %v1845_v43  ;;  %v5608_v22 = vadd.f32 %v4500_v8, %v1853_v63  ;;  %v5614_v0 = vadd.f32 %v4501_v16, %v1853_v63  ;;  %v1929_v16 = vld [vmem:[#allocation13 + $0xc0] sm:$0xff]  ;;  %v1934_v37 = vld [vmem:[#allocation13 + $0xe8] sm:$0xff]  ;;  %p4720_p2 = pnand %p4719_p7, %p4713_p11 }
 0x3d1   : > { %v5617_v17 = vadd.f32 %v4502_v4, %v1857_v45  ;;  %v1861_v6 = vrot.slane %v1829_v50, %v5294_v21  ;;  %v5623_v11 = vadd.f32 %v4503_v10, %v1857_v45  ;;  %4368 = vmatpush3.bf16.msra.mxu0 %v4367_v24  ;;  %v4370_v43 = vpack.c.bf16 %v1924_v25, %v1923_v42  ;;  %v1930_v4 = vld [vmem:[#allocation13 + $0xc8] sm:$0xff]  ;;  %v1931_v10 = vld [vmem:[#allocation13 + $0xd0] sm:$0xff]  ;;  %v1936_v25 = vld [vmem:[#allocation13 + $0xf8] sm:$0xff] }
 0x3d2   : > { %4039 = vmatmul.mubr.f32.gmra.mrb[28].mxu0 %v5576_v40  ;;  %4369 = vmatprep.subr.bf16.mxu0 %v4805_v32  ;;  %v4373_v54 = vpack.c.bf16 %v1926_v51, %v1925_v52  ;;  %v4376_v8 = vpack.c.bf16 %v1928_v5, %v1927_v1  ;;  %v4385_v24 = vpack.c.bf16 %v1934_v37, %v1933_v39  ;;  %v1935_v42 = vld [vmem:[#allocation13 + $0xf0] sm:$0xff] }
 0x3d3   : > { %4041 = vmatprep.mubr.f32.mxu0 %v5580_v48  ;;  %v5626_v13 = vadd.f32 %v4504_v12, %v1861_v6  ;;  %v5631_v27 = vadd.f32 %v4505_v18, %v1861_v6  ;;  %v4379_v6 = vpack.c.bf16 %v1930_v4, %v1929_v16  ;;  %v1932_v12 = vld [vmem:[#allocation13 + $0xd8] sm:$0xff]  ;;  %v5678_v52 = vrot.slane %v5459_v28, %v780_v46 }
 0x3d4   : > { %v4382_v18 = vpack.c.bf16 %v1932_v12, %v1931_v10 }
 0x3d5   : > { %4371 = vmatpush3.bf16.msra.mxu0 %v4370_v43  ;;  %v4388_v43 = vpack.c.bf16 %v1936_v25, %v1935_v42 }
 0x3d6   : > { %4042 = vmatmul.mubr.f32.gmra.mrb[30].mxu0 %v5586_v47  ;;  %4372 = vmatprep.subr.bf16.mxu0 %v4805_v32 }
 0x3d7   : > { %4044 = vmatprep.mubr.f32.mxu0 %v5589_v49 }
 0x3d9   : > { %4374 = vmatpush3.bf16.msra.mxu0 %v4373_v54 }
 0x3da   : > { %4045 = vmatmul.mubr.f32.gmra.mrb[32].mxu0 %v5596_v14  ;;  %4375 = vmatprep.subr.bf16.mxu0 %v4805_v32 }
 0x3db   : > { %4047 = vmatprep.mubr.f32.mxu0 %v5599_v59 }
 0x3dd   : > { %4377 = vmatpush3.bf16.msra.mxu0 %v4376_v8 }
 0x3de   : > { %4048 = vmatmul.mubr.f32.gmra.mrb[34].mxu0 %v5605_v15  ;;  %4378 = vmatprep.subr.bf16.mxu0 %v4805_v32 }
 0x3df   : > { %4050 = vmatprep.mubr.f32.mxu0 %v5608_v22 }
 0x3e0   : > { %v5636_v19 = vpop.f32.mrb[40].mxu1 }
 0x3e1   : > { %v5638_v62 = vpop.f32.mrb[41].mxu1  ;;  %4380 = vmatpush3.bf16.msra.mxu0 %v4379_v6 }
 0x3e2   : > { %4051 = vmatmul.mubr.f32.gmra.mrb[36].mxu0 %v5614_v0  ;;  %4381 = vmatprep.subr.bf16.mxu0 %v4805_v32 }
 0x3e3   : > { %4053 = vmatprep.mubr.f32.mxu0 %v5617_v17 }
 0x3e4   : > { %v5640_v29 = vpop.f32.mrb[42].mxu1 }
 0x3e5   : > { %v5642_v9 = vpop.f32.mrb[43].mxu1  ;;  %4383 = vmatpush3.bf16.msra.mxu0 %v4382_v18 }
 0x3e6   : > { %4054 = vmatmul.mubr.f32.gmra.mrb[38].mxu0 %v5623_v11  ;;  %4384 = vmatprep.subr.bf16.mxu0 %v4805_v32 }
 0x3e7   : > { %4056 = vmatprep.mubr.f32.mxu0 %v5626_v13 }
 0x3e8   : > { %v5644_v30 = vpop.f32.mrb[44].mxu1 }
 0x3e9   : > { %v5646_v33 = vpop.f32.mrb[45].mxu1  ;;  %4386 = vmatpush3.bf16.msra.mxu0 %v4385_v24 }
 0x3ea   : > { %4057 = vmatmul.mubr.f32.gmra.mrb[40].mxu0 %v5631_v27  ;;  %4387 = vmatprep.subr.bf16.mxu0 %v4805_v32 }
 0x3eb   : > { %4147 = vmatprep.mubr.msk.f32.mxu0 %vm4806_vm1, %v4807_v56 }
 0x3ec   : > { %v5648_v36 = vpop.f32.mrb[46].mxu1 }
 0x3ed   : > { %v5650_v38 = vpop.f32.mrb[47].mxu1  ;;  %4389 = vmatpush3.bf16.msra.mxu0 %v4388_v43 }
 0x3f0   : > { %v5652_v56 = vpop.f32.mrb[48].mxu1 }
 0x3f1   : > { %v5654_v41 = vpop.f32.mrb[49].mxu1 }
 0x3f4   : > { %v5657_v44 = vpop.f32.mrb[50].mxu1 }
 0x3f5   : > { %v5659_v26 = vpop.f32.mrb[51].mxu1 }
 0x3f8   : > { %v5662_v57 = vpop.f32.mrb[52].mxu1 }
 0x3f9   : > { %v5664_v63 = vpop.f32.mrb[53].mxu1 }
 0x3fc   : > { %v5667_v45 = vpop.f32.mrb[54].mxu1 }
 0x3fd   : > { %v5669_v50 = vpop.f32.mrb[55].mxu1 }
 0x4a1   : > { %v4037_v51 = vpop.f32.mrb[26].mxu0 }
 0x4a2   : > { %v2178_v54 = vadd.f32 %v4037_v51, %v5678_v52  ;;  %v2172_v1 = vpop.f32.mrb[27].mxu0 }
 0x4a3   : > { %v2173_v5 = vadd.f32 %v2172_v1, %v5678_v52 }
 0x4a4   : > { %v2252_v8 = vmax.f32 %v2178_v54, 0.0 }
 0x4a5   : > { %v2251_v16 = vmax.f32 %v2173_v5, 0.0  ;;  %v4040_v4 = vpop.f32.mrb[28].mxu0 }
 0x4a6   : > { %v2188_v32 = vadd.f32 %v4040_v4, %v5678_v52  ;;  %v2916_v6 = vmul.f32 %v5636_v19, %v2252_v8  ;;  %v2182_v10 = vpop.f32.mrb[29].mxu0 }
 0x4a7   : > { %v2183_v12 = vadd.f32 %v2182_v10, %v5678_v52  ;;  %v2915_v20 = vmul.f32 %v5638_v62, %v2251_v16 }
 0x4a8   : > { %v2254_v46 = vmax.f32 %v2188_v32, 0.0 }
 0x4a9   : > { %v2253_v28 = vmax.f32 %v2183_v12, 0.0  ;;  %v2931_v18 = vadd.f32 %v2916_v6, %v2915_v20  ;;  %v4043_v39 = vpop.f32.mrb[30].mxu0 }
 0x4aa   : > { %v2198_v37 = vadd.f32 %v4043_v39, %v5678_v52  ;;  %v2918_v24 = vmul.f32 %v5640_v29, %v2254_v46  ;;  %v2192_v42 = vpop.f32.mrb[31].mxu0 }
 0x4ab   : > { %v2932_v25 = vrot.slane %v2931_v18, 4  ;;  %v2193_v43 = vadd.f32 %v2192_v42, %v5678_v52  ;;  %v2917_v51 = vmul.f32 %v5642_v9, %v2253_v28 }
 0x4ac   : > { %v2256_v19 = vmax.f32 %v2198_v37, 0.0 }
 0x4ad   : > { %v2933_v54 = vadd.f32 %v2932_v25, %v2931_v18  ;;  %v2255_v1 = vmax.f32 %v2193_v43, 0.0  ;;  %v2938_v5 = vadd.f32 %v2918_v24, %v2917_v51  ;;  %v4046_v8 = vpop.f32.mrb[32].mxu0 }
 0x4ae   : > { %v2208_v62 = vadd.f32 %v4046_v8, %v5678_v52  ;;  %v2920_v16 = vmul.f32 %v5644_v30, %v2256_v19  ;;  %v2202_v4 = vpop.f32.mrb[33].mxu0 }
 0x4af   : > { %v2934_v32 = vrot.slane %v2933_v54, 2  ;;  %v2939_v6 = vrot.slane %v2938_v5, 4  ;;  %v2203_v29 = vadd.f32 %v2202_v4, %v5678_v52  ;;  %v2919_v10 = vmul.f32 %v5646_v33, %v2255_v1 }
 0x4b0   : > { %v2258_v12 = vmax.f32 %v2208_v62, 0.0 }
 0x4b1   : > { %v2935_v20 = vadd.f32 %v2934_v32, %v2933_v54  ;;  %v2940_v46 = vadd.f32 %v2939_v6, %v2938_v5  ;;  %v2257_v9 = vmax.f32 %v2203_v29, 0.0  ;;  %v2945_v28 = vadd.f32 %v2920_v16, %v2919_v10  ;;  %v4049_v18 = vpop.f32.mrb[34].mxu0 }
 0x4b2   : > { %v2218_v39 = vadd.f32 %v4049_v18, %v5678_v52  ;;  %v2922_v37 = vmul.f32 %v5648_v36, %v2258_v12  ;;  %v2212_v24 = vpop.f32.mrb[35].mxu0 }
 0x4b3   : > { %v2941_v42 = vrot.slane %v2940_v46, 2  ;;  %v2946_v30 = vrot.slane %v2945_v28, 4  ;;  %v2213_v25 = vadd.f32 %v2212_v24, %v5678_v52  ;;  %v2936_v43 = vrot.slane %v2935_v20, 1 }
 0x4b4   : > { %v2260_v51 = vmax.f32 %v2218_v39, 0.0  ;;  %v2921_v19 = vmul.f32 %v5650_v38, %v2257_v9 }
 0x4b5   : > { %v2942_v33 = vadd.f32 %v2941_v42, %v2940_v46  ;;  %v2947_v1 = vadd.f32 %v2946_v30, %v2945_v28  ;;  %v2259_v54 = vmax.f32 %v2213_v25, 0.0  ;;  %v4052_v5 = vpop.f32.mrb[36].mxu0  ;;  %v2937_v10 = vadd.f32 %v2936_v43, %v2935_v20 }
 0x4b6   : > { %v2952_v8 = vadd.f32 %v2922_v37, %v2921_v19  ;;  %v2228_v62 = vadd.f32 %v4052_v5, %v5678_v52  ;;  %v2924_v16 = vmul.f32 %v5652_v56, %v2260_v51  ;;  %v2222_v4 = vpop.f32.mrb[37].mxu0 }
 0x4b7   : > { %v2943_v36 = vrot.slane %v2942_v33, 1  ;;  %v2948_v32 = vrot.slane %v2947_v1, 2  ;;  %v2223_v6 = vadd.f32 %v2222_v4, %v5678_v52  ;;  %v2923_v29 = vmul.f32 %v5654_v41, %v2259_v54 }
 0x4b8   : > { %v2953_v12 = vrot.slane %v2952_v8, 4  ;;  %v2262_v18 = vmax.f32 %v2228_v62, 0.0 }
 0x4b9   : > { %v2944_v38 = vadd.f32 %v2943_v36, %v2942_v33  ;;  %v2949_v46 = vadd.f32 %v2948_v32, %v2947_v1  ;;  %v2261_v9 = vmax.f32 %v2223_v6, 0.0  ;;  %v2959_v28 = vadd.f32 %v2924_v16, %v2923_v29  ;;  %v4055_v39 = vpop.f32.mrb[38].mxu0 }
 0x4ba   : > { %v2954_v37 = vadd.f32 %v2953_v12, %v2952_v8  ;;  %v2238_v24 = vadd.f32 %v4055_v39, %v5678_v52  ;;  %v2926_v56 = vmul.f32 %v5657_v44, %v2262_v18  ;;  %v2232_v42 = vpop.f32.mrb[39].mxu0 }
 0x4bb   : > { %v2995_v30 = vsel %vm1672_vm2, %v2944_v38, %v2937_v10  ;;  %v2950_v25 = vrot.slane %v2949_v46, 1  ;;  %v2960_v51 = vrot.slane %v2959_v28, 4  ;;  %v2233_v41 = vadd.f32 %v2232_v42, %v5678_v52 }
 0x4bc   : > { %v2955_v20 = vrot.slane %v2954_v37, 2  ;;  %v2264_v43 = vmax.f32 %v2238_v24, 0.0  ;;  %v2925_v19 = vmul.f32 %v5659_v26, %v2261_v9 }
 0x4bd   : > { %v2951_v33 = vadd.f32 %v2950_v25, %v2949_v46  ;;  %v2961_v1 = vadd.f32 %v2960_v51, %v2959_v28  ;;  %v2263_v54 = vmax.f32 %v2233_v41, 0.0  ;;  %v4058_v5 = vpop.f32.mrb[40].mxu0 }
 0x4be   : > { %v2956_v8 = vadd.f32 %v2955_v20, %v2954_v37  ;;  %v2966_v62 = vadd.f32 %v2926_v56, %v2925_v19  ;;  %v2248_v16 = vadd.f32 %v4058_v5, %v5678_v52  ;;  %v2928_v44 = vmul.f32 %v5662_v57, %v2264_v43  ;;  %v2242_v4 = vpop.f32.mrb[41].mxu0 }
 0x4bf   : > { %v2996_v36 = vsel %vm1674_vm3, %v2951_v33, %v2995_v30  ;;  %v2962_v32 = vrot.slane %v2961_v1, 2  ;;  %v2243_v6 = vadd.f32 %v2242_v4, %v5678_v52  ;;  %v2927_v29 = vmul.f32 %v5664_v63, %v2263_v54 }
 0x4c0   : > { %v2957_v10 = vrot.slane %v2956_v8, 1  ;;  %v2967_v26 = vrot.slane %v2966_v62, 4  ;;  %v2266_v12 = vmax.f32 %v2248_v16, 0.0 }
 0x4c1   : > { %v2963_v18 = vadd.f32 %v2962_v32, %v2961_v1  ;;  %v2265_v38 = vmax.f32 %v2243_v6, 0.0  ;;  %v2973_v46 = vadd.f32 %v2928_v44, %v2927_v29  ;;  %v3005_v32 = vrot.slane %v5518_v60, 7 }
 0x4c2   : > { %v2958_v9 = vadd.f32 %v2957_v10, %v2956_v8  ;;  %v2968_v28 = vadd.f32 %v2967_v26, %v2966_v62  ;;  %v2930_v39 = vmul.f32 %v5667_v45, %v2266_v12  ;;  %v3007_v29 = vrot.slane %v5525_v53, 6 }
 0x4c3   : > { %v2964_v37 = vrot.slane %v2963_v18, 1  ;;  %v2974_v57 = vrot.slane %v2973_v46, 4  ;;  %v2929_v24 = vmul.f32 %v5669_v50, %v2265_v38  ;;  %v3009_v26 = vrot.slane %v5531_v55, 5 }
 0x4c4   : > { %v2997_v56 = vsel %vm1676_vm4, %v2958_v9, %v2996_v36  ;;  %v2969_v42 = vrot.slane %v2968_v28, 2  ;;  %v3003_v36 = vrot.slane %v5522_v23, 1  ;;  %v3015_v60 = vrot.slane %v5546_v7, 2 }
 0x4c5   : > { %v2965_v52 = vadd.f32 %v2964_v37, %v2963_v18  ;;  %v2975_v30 = vadd.f32 %v2974_v57, %v2973_v46  ;;  %v2980_v63 = vadd.f32 %v2930_v39, %v2929_v24  ;;  %v3011_v18 = vrot.slane %v5536_v61, 4 }
 0x4c6   : > { %v2970_v25 = vadd.f32 %v2969_v42, %v2968_v28  ;;  %v3004_v6 = vsel %vm1672_vm2, %v5515_v58, %v3003_v36  ;;  %v3013_v46 = vrot.slane %v5541_v3, 3 }
 0x4c7   : > { %v2976_v51 = vrot.slane %v2975_v30, 2  ;;  %v2981_v41 = vrot.slane %v2980_v63, 4  ;;  %v2998_v20 = vsel %vm1678_vm5, %v2965_v52, %v2997_v56  ;;  %v3006_v10 = vsel %vm1674_vm3, %v3005_v32, %v3004_v6 }
 0x4c8   : > { %v2971_v43 = vrot.slane %v2970_v25, 1  ;;  %v3008_v12 = vsel %vm1676_vm4, %v3007_v29, %v3006_v10 }
 0x4c9   : > { %v2977_v19 = vadd.f32 %v2976_v51, %v2975_v30  ;;  %v2982_v33 = vadd.f32 %v2981_v41, %v2980_v63  ;;  %v3010_v38 = vsel %vm1678_vm5, %v3009_v26, %v3008_v12 }
 0x4ca   : > { %v2972_v1 = vadd.f32 %v2971_v43, %v2970_v25  ;;  %v3012_v23 = vsel %vm1680_vm6, %v3011_v18, %v3010_v38 }
 0x4cb   : > { %v2978_v45 = vrot.slane %v2977_v19, 1  ;;  %v2983_v54 = vrot.slane %v2982_v33, 2  ;;  %v3014_v58 = vsel %vm1682_vm7, %v3013_v46, %v3012_v23 }
 0x4cc   : > { %v2999_v5 = vsel %vm1680_vm6, %v2972_v1, %v2998_v20  ;;  %v3016_v53 = vsel %vm1684_vm8, %v3015_v60, %v3014_v58 }
 0x4cd   : > { %v2979_v50 = vadd.f32 %v2978_v45, %v2977_v19  ;;  %v2984_v8 = vadd.f32 %v2983_v54, %v2982_v33 }
 0x4cf   : > { %v2985_v62 = vrot.slane %v2984_v8, 1  ;;  %v3000_v16 = vsel %vm1682_vm7, %v2979_v50, %v2999_v5 }
 0x4d1   : > { %v2986_v44 = vadd.f32 %v2985_v62, %v2984_v8 }
 0x4d3   : > { %v3001_v4 = vsel %vm1684_vm8, %v2986_v44, %v3000_v16 }
 0x4d4   : > { %4148 = vmatmul.mubr.f32.vlgmr.msra.gmra.mrb[42].mxu0 %v3001_v4 }
 0x5a7   : > { %v3084_v9 = vpop.f32.mrb[42].mxu0 }
 0x5a8   : > { %v3085_v28 = vadd.f32 %v3084_v9, %v3016_v53  ;;  %v4149_v39 = vpop.f32.mrb[43].mxu0 }
 0x5aa   : > { %v3089_v55 = vcombine.high %v3085_v28, %v3085_v28  ;;  %v3096_v37 = vrot.slane %v3085_v28, %v5554_v2 }
 0x5ac   : > { %v3103_v61 = vrot.slane %v3089_v55, %v5554_v2  ;;  %v3104_v57 = vcombine.high %v3096_v37, %v3096_v37  ;;  %v3112_v24 = vrot.slane %v3096_v37, %v5554_v2 }
 0x5ae   : > { %v3105_v3 = vcombine.high %v3103_v61, %v3103_v61  ;;  %v3119_v56 = vrot.slane %v3103_v61, %v5554_v2  ;;  %v3126_v7 = vrot.slane %v3104_v57, %v5554_v2  ;;  %v3134_v42 = vcombine.high %v3112_v24, %v3112_v24 }
 0x5af   : > { %v3141_v52 = vrot.slane %v3112_v24, %v5294_v21 }
 0x5b0   : > { %v3133_v30 = vrot.slane %v3105_v3, %v5554_v2  ;;  %v3135_v63 = vcombine.high %v3119_v56, %v3119_v56  ;;  %v3136_v25 = vcombine.high %v3126_v7, %v3126_v7  ;;  %v3145_v51 = vrot.slane %v3126_v7, %v5294_v21 }
 0x5b1   : > { %v3149_v41 = vrot.slane %v3134_v42, %v5294_v21  ;;  %v3157_v20 = vrot.slane %v3119_v56, %v5294_v21  ;;  %v3178_v43 = vadd.f32 %v3141_v52, %v5562_v31  ;;  %v3179_v19 = vadd.f32 %v3141_v52, %v5565_v35 }
 0x5b2   : > { %v3137_v33 = vcombine.high %v3133_v30, %v3133_v30  ;;  %v3153_v1 = vrot.slane %v3136_v25, %v5294_v21  ;;  %v3161_v45 = vrot.slane %v3133_v30, %v5294_v21  ;;  %v3165_v54 = vrot.slane %v3135_v63, %v5294_v21 }
 0x5b3   : > { %v3180_v2 = vadd.f32 %v3145_v51, %v5568_v34  ;;  %v3181_v5 = vadd.f32 %v3145_v51, %v5576_v40  ;;  %v3182_v50 = vadd.f32 %v3149_v41, %v5580_v48  ;;  %v3183_v8 = vadd.f32 %v3149_v41, %v5586_v47 }
 0x5b4   : > { %v3169_v62 = vrot.slane %v3137_v33, %v5294_v21  ;;  %v3184_v31 = vadd.f32 %v3153_v1, %v5589_v49  ;;  %v3185_v35 = vadd.f32 %v3153_v1, %v5596_v14  ;;  %v3186_v16 = vadd.f32 %v3157_v20, %v5599_v59 }
 0x5b5   : > { %v3187_v44 = vadd.f32 %v3157_v20, %v5605_v15  ;;  %v3188_v4 = vadd.f32 %v3161_v45, %v5608_v22  ;;  %v3189_v34 = vadd.f32 %v3161_v45, %v5614_v0  ;;  %v3190_v40 = vadd.f32 %v3165_v54, %v5617_v17 }
 0x5b6   : > { %v3191_v48 = vadd.f32 %v3165_v54, %v5623_v11  ;;  %v3192_v47 = vadd.f32 %v3169_v62, %v5626_v13  ;;  %v3193_v21 = vadd.f32 %v3169_v62, %v5631_v27  ;;  %v3194_v36 = vadd.f32 %v3179_v19, %v3178_v43 }
 0x5b7   : > { %v3201_v49 = vadd.f32 %v3181_v5, %v3180_v2  ;;  %v3208_v32 = vadd.f32 %v3183_v8, %v3182_v50  ;;  %v3215_v14 = vadd.f32 %v3185_v35, %v3184_v31  ;;  %v3222_v6 = vadd.f32 %v3187_v44, %v3186_v16 }
 0x5b8   : > { %v3195_v59 = vrot.slane %v3194_v36, 4  ;;  %v3229_v29 = vadd.f32 %v3189_v34, %v3188_v4  ;;  %v3236_v15 = vadd.f32 %v3191_v48, %v3190_v40  ;;  %v3243_v10 = vadd.f32 %v3193_v21, %v3192_v47 }
 0x5b9   : > { %v3202_v22 = vrot.slane %v3201_v49, 4  ;;  %v3209_v26 = vrot.slane %v3208_v32, 4  ;;  %v3216_v0 = vrot.slane %v3215_v14, 4  ;;  %v3223_v12 = vrot.slane %v3222_v6, 4 }
 0x5ba   : > { %v3196_v17 = vadd.f32 %v3195_v59, %v3194_v36  ;;  %v3230_v18 = vrot.slane %v3229_v29, 4  ;;  %v3237_v11 = vrot.slane %v3236_v15, 4  ;;  %v3244_v38 = vrot.slane %v3243_v10, 4 }
 0x5bb   : > { %v3203_v13 = vadd.f32 %v3202_v22, %v3201_v49  ;;  %v3210_v46 = vadd.f32 %v3209_v26, %v3208_v32  ;;  %v3217_v27 = vadd.f32 %v3216_v0, %v3215_v14  ;;  %v3224_v23 = vadd.f32 %v3223_v12, %v3222_v6 }
 0x5bc   : > { %v3197_v60 = vrot.slane %v3196_v17, 2  ;;  %v3231_v58 = vadd.f32 %v3230_v18, %v3229_v29  ;;  %v3238_v53 = vadd.f32 %v3237_v11, %v3236_v15  ;;  %v3245_v9 = vadd.f32 %v3244_v38, %v3243_v10 }
 0x5bd   : > { %v3204_v28 = vrot.slane %v3203_v13, 2  ;;  %v3211_v39 = vrot.slane %v3210_v46, 2  ;;  %v3218_v55 = vrot.slane %v3217_v27, 2  ;;  %v3225_v37 = vrot.slane %v3224_v23, 2 }
 0x5be   : > { %v3198_v61 = vadd.f32 %v3197_v60, %v3196_v17  ;;  %v3232_v57 = vrot.slane %v3231_v58, 2  ;;  %v3239_v24 = vrot.slane %v3238_v53, 2  ;;  %v3246_v3 = vrot.slane %v3245_v9, 2 }
 0x5bf   : > { %v3205_v56 = vadd.f32 %v3204_v28, %v3203_v13  ;;  %v3212_v7 = vadd.f32 %v3211_v39, %v3210_v46  ;;  %v3219_v42 = vadd.f32 %v3218_v55, %v3217_v27  ;;  %v3226_v52 = vadd.f32 %v3225_v37, %v3224_v23 }
 0x5c0   : > { %v3199_v30 = vrot.slane %v3198_v61, 1  ;;  %v3233_v63 = vadd.f32 %v3232_v57, %v3231_v58  ;;  %v3240_v25 = vadd.f32 %v3239_v24, %v3238_v53  ;;  %v3247_v43 = vadd.f32 %v3246_v3, %v3245_v9 }
 0x5c1   : > { %v3206_v51 = vrot.slane %v3205_v56, 1  ;;  %v3213_v41 = vrot.slane %v3212_v7, 1  ;;  %v3220_v20 = vrot.slane %v3219_v42, 1  ;;  %v3227_v33 = vrot.slane %v3226_v52, 1 }
 0x5c2   : > { %v3200_v19 = vadd.f32 %v3199_v30, %v3198_v61  ;;  %v3234_v2 = vrot.slane %v3233_v63, 1  ;;  %v3241_v5 = vrot.slane %v3240_v25, 1  ;;  %v3248_v8 = vrot.slane %v3247_v43, 1 }
 0x5c3   : > { %v3207_v1 = vadd.f32 %v3206_v51, %v3205_v56  ;;  %v3214_v45 = vadd.f32 %v3213_v41, %v3212_v7  ;;  %v3221_v54 = vadd.f32 %v3220_v20, %v3219_v42  ;;  %v3228_v62 = vadd.f32 %v3227_v33, %v3226_v52 }
 0x5c4   : > { %v3235_v35 = vadd.f32 %v3234_v2, %v3233_v63  ;;  %v3242_v44 = vadd.f32 %v3241_v5, %v3240_v25  ;;  %v3249_v34 = vadd.f32 %v3248_v8, %v3247_v43 }
 0x5c5   : > { %v3258_v50 = vsel %vm1672_vm2, %v3207_v1, %v3200_v19 }
 0x5c6   : > { %v3259_v31 = vsel %vm1674_vm3, %v3214_v45, %v3258_v50 }
 0x5c7   : > { %v3260_v16 = vsel %vm1676_vm4, %v3221_v54, %v3259_v31 }
 0x5c8   : > { %v3261_v4 = vsel %vm1678_vm5, %v3228_v62, %v3260_v16 }
 0x5c9   : > { %v3262_v40 = vsel %vm1680_vm6, %v3235_v35, %v3261_v4 }
 0x5ca   : > { %v3263_v48 = vsel %vm1682_vm7, %v3242_v44, %v3262_v40 }
 0x5cb   : > { %v3264_v47 = vsel %vm1684_vm8, %v3249_v34, %v3263_v48 }
 0x5cc   : > { %3266 = vst [vmem:[%s486_s24] sm:$0xff] %v3264_v47 }
 0x5cd   : > { %4723 = shalt.err (!%p4720_p2)
}
 0x5ce   : > { %s4724_s27 = scalar_lea.hbm %s5775_s11, 128  ;;  %s4728_s10 = scalar_lea.hbm %s5882_s4, 256 }
 0x5cf   : > { %p4725_p12 = scmp.ne.s32.totalorder %s5775_s11, %s4724_s27  ;;  %p4729_p6 = scmp.lt.u32.totalorder %s5775_s11, %s5882_s4 }
 0x5d0   : > { %p4730_p8 = scmp.lt.u32.totalorder %s4728_s10, %s4724_s27  ;;  %p4732_p10 = scmp.lt.u32.totalorder %s4724_s27, %s5775_s11 }
 0x5d1   : > { %p4726_p3 = pnand %p4725_p12, %p5883_p1 }
 0x5d2   : > { %p4731_p9 = por %p4730_p8, %p4729_p6 }
 0x5d3   : > { %p4727_p0 = pneg %p4726_p3 }
 0x5d4   : > { %p4733_p5 = por %p4732_p10, %p4731_p9 }
 0x5d6   : > { %p4734_p11 = pnand %p4733_p5, %p4727_p0 }
 0x5d8   : > { %4737 = shalt.err (!%p4734_p11)
}
 0x5d9   : > { %4410 = dma.vmem_to_hbm [thread:$0]  (%p5883_p1), %s5777_s14, 128, %s5775_s11, %s3268_s9  }
 0x5da PF: > { %s5884_s20 = sld [smem:[#allocation21_spill]]  ;;  %s5885_s18 = sld [smem:[#allocation25_spill]] }
 0x5db   : > { %p5887_p13 = scmp.ge.s32.totalorder %s4792_s30, 2 }
 0x5e0   : > { %s3293_s12 = sand.u32 1, %s5884_s20   ;;  %p5886_p4 = scmp.ne.s32.totalorder %s5885_s18, 0 }
 0x5e1   : > { %s3294_s22 = scalar_lea.sflag [#allocation4], %s3293_s12 }
 0x5e2   : > { %p4436_p7 = pnand %p5887_p13, %p5886_p4 }
 0x5e4   : > { %4775 = dma.done.wait (!%p4436_p7), %s3294_s22, 128  }
 0x5e5   : > { %4777 = vsyncadd (!%p4436_p7), %s3294_s22, 4294967168  ;;  %s5888_s30 = sld [smem:[#allocation22_spill]]  ;;  %s5889_s24 = sld [smem:[#allocation23_spill]] }
 0x5e6   : > { %s5890_s27 = smov %s4784_s28  ;;  %s5891_s28 = smov %s4788_s29 }
 0x5eb   : > { %p28_p2 = scmp.ge.s32.totalorder %s5888_s30, 4   ;;  %s5892_s29 = smov %s5889_s24 }
 0x5ed   :  { %30 = sbr.rel (!%p28_p2) target bundleno = 14 (0xe), region = 149 }
 0x5f4   :  { %3299 = vsyncpa [#allocation3], 1 }
 0x5f5   :  { %3301 = vsyncpa [#allocation3 + $0x1], 1 }
 0x5f6   :  { %3302 = vsyncpa [#allocation6], 1 }
 0x5f7   :  { %3304 = vsyncpa [#allocation6 + $0x1], 1 }
 0x5f8   :  { %3305 = vsyncpa [#allocation9], 1 }
 0x5f9   :  { %3307 = vsyncpa [#allocation9 + $0x1], 1 }
 0x5fa   :  { %3308 = vsyncpa [#allocation12], 1 }
 0x5fb   :  { %3309 = vsyncpa [#allocation4], 1 }
 0x5fc   :  { %3311 = vsyncpa [#allocation4 + $0x1], 1 }

</bundles_post_ra>
